<compile_context>
chip_gen: v7x
topology: tpu7x:2x2x1
jax: 0.10.0
libtpu: 0.0.40
codegen_flags: <defaults>
</compile_context>

<pallas_src>
import functools
import math

import numpy as np
import jax
import jax.numpy as jnp
from jax.experimental import pallas as pl
from jax.experimental.pallas import tpu as pltpu


# ----------------------------- Pallas kernel -------------------------------
def _lstm_block_kernel(len_ref, gx_ref, wh_ref, h0_ref, c0_ref,
                       y_ref, hT_ref, cT_ref, h_scr, c_scr,
                       *, tb_steps, dh):
    """One time block of the fused (all-directions) LSTM recurrence.

    Shapes (DH = num_dirs * hidden):
      len_ref : (B, 1)   int32         gx_ref : (tb, B, 4*DH)   (maybe bf16)
      wh_ref  : (DH, 4*DH)             h0/c0  : (B, DH) f32
      y_ref   : (1, B, tb*DH) f32 packed, lane-dense (tb*DH % 128 == 0)
      hT/cT   : (B, DH) f32            h_scr/c_scr : (B, DH) f32 scratch
    Gate column layout (width DH each): [ i | f | o | g ], directions
    interleaved inside each block as [dir0 | dir1 | ...].
    """
    blk = pl.program_id(0)

    @pl.when(blk == 0)
    def _():
        h_scr[...] = h0_ref[...]
        c_scr[...] = c0_ref[...]

    wh = wh_ref[...]                 # (DH, 4*DH), f32 or bf16
    lens = len_ref[...]              # (B, 1) int32
    t0 = blk * tb_steps

    h = h_scr[...]
    c = c_scr[...]
    # Static unroll so the packed-y column offsets are compile-time constants.
    # TODO(synk): at production B*H sizes switch to lax.fori_loop(unroll=4..8)
    # (and per-row y stores) to bound live ranges / vreg pressure.
    for i in range(tb_steps):
        # Only the fused recurrent matmul is on the serial path; the input
        # projection + bias was hoisted into gates_x (streamed, possibly bf16).
        gates = gx_ref[i].astype(jnp.float32) + jnp.dot(
            h.astype(wh.dtype), wh, preferred_element_type=jnp.float32)
        ifo = jax.nn.sigmoid(gates[:, :3 * dh])   # one sigmoid over 3*DH lanes
        g = jnp.tanh(gates[:, 3 * dh:])           # one tanh over DH lanes
        c_new = ifo[:, dh:2 * dh] * c + ifo[:, :dh] * g
        h_new = ifo[:, 2 * dh:] * jnp.tanh(c_new)
        # packed-sequence masking: only advance state while t < length[b]
        # (both directions share the mask: the backward dir runs on the
        # per-sequence-reversed input, whose valid part is also a prefix).
        mask = (t0 + i) < lens                    # (B, 1)
        h = jnp.where(mask, h_new, h)
        c = jnp.where(mask, c_new, c)
        # pad_packed_sequence zero-pads past each sequence's length.
        # Lane-dense packed writeback: column block i of the (B, tb*DH) tile.
        y_ref[0, :, i * dh:(i + 1) * dh] = jnp.where(mask, h_new, 0.0)

    h_scr[...] = h
    c_scr[...] = c

    @pl.when(blk == pl.num_programs(0) - 1)
    def _():
        hT_ref[...] = h
        cT_ref[...] = c


# ----------------------- VMEM-aware block sizing ---------------------------
def _vmem_capacity_bytes():
    try:
        cap = getattr(pltpu.get_tpu_info(), "vmem_capacity_bytes", None)
        if cap:
            return int(cap)
    except Exception:
        pass
    return 64 << 20   # conservative fallback (v7x per-TC VMEM)


def _pick_time_block(t_steps, b_pad, dh, gates_itemsize, vmem_cap, target=32):
    """Pick a time-block size: lane-dense packed output + fits the VMEM budget."""
    lane_mult = max(1, 128 // math.gcd(128, dh))     # tb*DH must be %128==0
    # Double-buffered streamed blocks per time step: gates_x in + packed y out.
    per_step = 2 * b_pad * 4 * dh * gates_itemsize + 2 * b_pad * dh * 4
    budget = int(min(vmem_cap // 2, 48 << 20))       # headroom for weights/scratch
    tb_cap = max(lane_mult, budget // max(per_step, 1))
    tb = max(lane_mult, min(target, tb_cap))
    tb = max(lane_mult, (tb // lane_mult) * lane_mult)
    t_round = -(-t_steps // lane_mult) * lane_mult   # don't exceed run length
    tb = max(lane_mult, min(tb, t_round))
    n_tb = -(-t_steps // tb)
    return tb, tb * n_tb


# --------------------------- pallas_call wrapper ----------------------------
def lstm_fused_directions(gates_x, len_col, w_bd, h0, c0, tb_steps,
                          vmem_limit_bytes):
    """Run the fused multi-direction LSTM recurrence over time."""
    T_pad, B_pad, G = gates_x.shape
    DH = G // 4
    n_tb = T_pad // tb_steps

    grid_spec = pltpu.PrefetchScalarGridSpec(
        num_scalar_prefetch=0,
        grid=(n_tb,),
        in_specs=[
            pl.BlockSpec((B_pad, 1), lambda t: (0, 0)),                 # lengths
            pl.BlockSpec((tb_steps, B_pad, G), lambda t: (t, 0, 0)),    # gates_x
            pl.BlockSpec((DH, G), lambda t: (0, 0)),                    # W_hh (block-diag)
            pl.BlockSpec((B_pad, DH), lambda t: (0, 0)),                # h0
            pl.BlockSpec((B_pad, DH), lambda t: (0, 0)),                # c0
        ],
        out_specs=[
            pl.BlockSpec((1, B_pad, tb_steps * DH), lambda t: (t, 0, 0)),  # packed y
            pl.BlockSpec((B_pad, DH), lambda t: (0, 0)),                   # h_final
            pl.BlockSpec((B_pad, DH), lambda t: (0, 0)),                   # c_final
        ],
        scratch_shapes=[pltpu.VMEM((B_pad, DH), jnp.float32),
                        pltpu.VMEM((B_pad, DH), jnp.float32)],
    )

    kernel = functools.partial(_lstm_block_kernel, tb_steps=tb_steps, dh=DH)
    y, hT, cT = pl.pallas_call(
        kernel,
        out_shape=(jax.ShapeDtypeStruct((n_tb, B_pad, tb_steps * DH), jnp.float32),
                   jax.ShapeDtypeStruct((B_pad, DH), jnp.float32),
                   jax.ShapeDtypeStruct((B_pad, DH), jnp.float32)),
        grid_spec=grid_spec,
        compiler_params=pltpu.CompilerParams(
            # single serial grid axis = the recurrence; must stay "arbitrary".
            dimension_semantics=("arbitrary",),
            vmem_limit_bytes=vmem_limit_bytes),
    )(len_col, gates_x, w_bd, h0, c0)
    return y, hT, cT


# ------------------------------- glue (JAX) --------------------------------
def reverse_valid(x_bt, lengths):
    """Reverse each sequence within its valid length (zeros past length)."""
    T = x_bt.shape[1]
    idx = lengths[:, None] - 1 - jnp.arange(T)[None, :]          # (B, T)
    gathered = jnp.take_along_axis(x_bt, jnp.clip(idx, 0, T - 1)[:, :, None],
                                   axis=1)
    return jnp.where((idx >= 0)[:, :, None], gathered, 0.0)


def _reorder_gates_ifog(w):
    """Permute PyTorch gate blocks [i,f,g,o] (axis 0) -> [i,f,o,g]."""
    H = w.shape[0] // 4
    return jnp.concatenate([w[:2 * H], w[3 * H:], w[2 * H:3 * H]], axis=0)


def encoder_lstm_forward(params, ids, lengths, hidden, *,
                         gates_dtype=jnp.bfloat16,
                         recurrent_dtype=jnp.bfloat16,
                         time_block_target=32):
    """Mirrors EncoderLSTM.forward (enforce_sorted=True -> lengths descending).

    gates_dtype / recurrent_dtype = jnp.float32 gives exact parity with the
    PyTorch f32 module; the bf16 defaults halve HBM traffic / weight footprint
    (gate activations and state updates stay f32 either way).
    """
    emb = params["embedding"][ids]            # (B, T, E) embedding lookup
    # TODO(synk): nn.Dropout training-mode RNG is not reproducible; applied as
    # eval-mode identity here.
    x = emb.astype(jnp.float32)
    h0, c0 = hidden                           # each (num_dirs, B, H)
    D = 2 if params["bidirectional"] else 1
    B, T, E = x.shape
    H = h0.shape[-1]
    DH = D * H

    # pad_packed_sequence pads only to max(lengths): trim the serial loop.
    # (host-side: this wrapper is meant to be called outside jit)
    t_out = int(jax.device_get(jnp.max(lengths)))
    x = x[:, :t_out]

    # Per-direction time-major inputs; backward dir = forward LSTM on
    # per-sequence-reversed input.
    x_dirs = [jnp.transpose(x, (1, 0, 2))]
    suffixes = ["f"] + (["b"] if D == 2 else [])
    if D == 2:
        x_dirs.append(jnp.transpose(reverse_valid(x, lengths), (1, 0, 2)))

    gx_dirs, whT_dirs = [], []
    for d, sfx in enumerate(suffixes):
        w_ih = _reorder_gates_ifog(params[f"w_ih_{sfx}"])              # (4H, E)
        w_hh = _reorder_gates_ifog(params[f"w_hh_{sfx}"])              # (4H, H)
        bias = _reorder_gates_ifog(params[f"b_ih_{sfx}"] + params[f"b_hh_{sfx}"])
        # Hoisted input projection + bias: one big parallel matmul per dir.
        gx = jnp.einsum("tbe,ge->tbg", x_dirs[d], w_ih,
                        preferred_element_type=jnp.float32) + bias     # (T,B,4H)
        gx_dirs.append(gx.reshape(t_out, B, 4, H))
        whT_dirs.append(w_hh.T.reshape(H, 4, H))                       # (H,4,H)

    # Interleave directions: combined gate columns [ i_d0..i_dD | f.. | o.. | g.. ]
    gx = jnp.stack(gx_dirs, axis=3).reshape(t_out, B, 4 * DH)          # (T,B,4DH)

    # Block-diagonal recurrent weight: one jnp.dot per step drives all dirs.
    w_bd = jnp.zeros((DH, 4 * DH), jnp.float32)
    for d in range(D):
        for k in range(4):
            w_bd = w_bd.at[d * H:(d + 1) * H,
                           k * DH + d * H:k * DH + (d + 1) * H].set(whT_dirs[d][:, k, :])

    # Pad batch to a sublane multiple; pick a VMEM-aware, lane-dense time block.
    # TODO(synk): for non-toy shapes also pad H to a multiple of 128 (lane fill).
    B_pad = -(-B // 8) * 8
    vmem_cap = _vmem_capacity_bytes()
    tb, t_pad = _pick_time_block(t_out, B_pad, DH, jnp.dtype(gates_dtype).itemsize,
                                 vmem_cap, target=time_block_target)
    vmem_limit = int(max(32 << 20, min(vmem_cap * 3 // 4, 100 << 20)))

    gx = jnp.pad(gx, ((0, t_pad - t_out), (0, B_pad - B), (0, 0))).astype(gates_dtype)
    len_col = jnp.pad(lengths.astype(jnp.int32), (0, B_pad - B)).reshape(B_pad, 1)
    h0c = jnp.pad(jnp.transpose(h0.astype(jnp.float32), (1, 0, 2)).reshape(B, DH),
                  ((0, B_pad - B), (0, 0)))
    c0c = jnp.pad(jnp.transpose(c0.astype(jnp.float32), (1, 0, 2)).reshape(B, DH),
                  ((0, B_pad - B), (0, 0)))

    y_packed, hT, cT = lstm_fused_directions(
        gx, len_col, w_bd.astype(recurrent_dtype), h0c, c0c, tb, vmem_limit)

    # Unpack the lane-dense y: (n_tb, B_pad, tb*DH) -> (T_out, B, DH)
    n_tb = t_pad // tb
    y = (y_packed.reshape(n_tb, B_pad, tb, DH)
         .transpose(0, 2, 1, 3).reshape(t_pad, B_pad, DH))
    y = jnp.transpose(y[:t_out, :B], (1, 0, 2))                 # (B, T_out, DH)

    outs = [y[..., :H]]
    if D == 2:
        outs.append(reverse_valid(y[..., H:], lengths))          # un-reverse bwd dir
    Y = jnp.concatenate(outs, axis=-1)                           # (B, T_out, H*D)

    hT = jnp.transpose(hT[:B].reshape(B, D, H), (1, 0, 2))       # (D, B, H)
    cT = jnp.transpose(cT[:B].reshape(B, D, H), (1, 0, 2))
    return Y, (hT, cT)


# --------------------------- pure-JAX reference -----------------------------
def _lstm_ref_dir(x, lengths, w_ih, w_hh, b_ih, b_hh, h0, c0):
    B, T, E = x.shape
    H = h0.shape[-1]
    h, c = h0, c0
    ys = []
    for t in range(T):
        g = x[:, t] @ w_ih.T + b_ih + h @ w_hh.T + b_hh
        i = jax.nn.sigmoid(g[:, :H]); f = jax.nn.sigmoid(g[:, H:2 * H])
        gg = jnp.tanh(g[:, 2 * H:3 * H]); o = jax.nn.sigmoid(g[:, 3 * H:])
        c_new = f * c + i * gg
        h_new = o * jnp.tanh(c_new)
        m = (t < lengths)[:, None]
        h = jnp.where(m, h_new, h); c = jnp.where(m, c_new, c)
        ys.append(jnp.where(m, h_new, 0.0))
    return jnp.stack(ys, 1), h, c


# --------------------------------- main -------------------------------------
if __name__ == "__main__":
    vocab, E, H, B, T = 20, 16, 32, 2, 8
    padding_idx = 0
    bidirectional = True

    key = jax.random.PRNGKey(0)
    ks = jax.random.split(key, 12)
    k_emb = 1.0 / np.sqrt(H)

    emb_tbl = jax.random.normal(ks[0], (vocab, E), jnp.float32)
    emb_tbl = emb_tbl.at[padding_idx].set(0.0)     # padding_idx row is zero

    def u(k, shape):
        return jax.random.uniform(k, shape, jnp.float32, -k_emb, k_emb)

    params = {
        "embedding": emb_tbl,
        "bidirectional": bidirectional,
        "w_ih_f": u(ks[1], (4 * H, E)), "w_hh_f": u(ks[2], (4 * H, H)),
        "b_ih_f": u(ks[3], (4 * H,)),   "b_hh_f": u(ks[4], (4 * H,)),
        "w_ih_b": u(ks[5], (4 * H, E)), "w_hh_b": u(ks[6], (4 * H, H)),
        "b_ih_b": u(ks[7], (4 * H,)),   "b_hh_b": u(ks[8], (4 * H,)),
    }

    lengths_np = np.array([8, 5], dtype=np.int32)  # sorted desc (enforce_sorted)
    lengths = jnp.asarray(lengths_np)
    ids = jax.random.randint(ks[9], (B, T), 1, vocab, jnp.int32)
    ids = jnp.where(jnp.arange(T)[None, :] < lengths[:, None], ids, padding_idx)

    num_dirs = 2 if bidirectional else 1
    hidden = (jnp.zeros((num_dirs, B, H), jnp.float32),
              jnp.zeros((num_dirs, B, H), jnp.float32))

    # ----- exact-parity run (f32 streamed gates + f32 recurrent weights) -----
    Y, (h_n, c_n) = encoder_lstm_forward(params, ids, lengths, hidden,
                                         gates_dtype=jnp.float32,
                                         recurrent_dtype=jnp.float32)
    Y = jax.block_until_ready(Y)
    h_n = jax.block_until_ready(h_n)
    c_n = jax.block_until_ready(c_n)

    T_out = int(lengths_np.max())   # pad_packed_sequence pads to max(lengths)

    # pure-JAX reference
    emb = params["embedding"][ids]
    yf, hf, cf = _lstm_ref_dir(emb, lengths, params["w_ih_f"], params["w_hh_f"],
                               params["b_ih_f"], params["b_hh_f"],
                               hidden[0][0], hidden[1][0])
    x_rev = reverse_valid(emb, lengths)
    yr, hb, cb = _lstm_ref_dir(x_rev, lengths, params["w_ih_b"], params["w_hh_b"],
                               params["b_ih_b"], params["b_hh_b"],
                               hidden[0][1], hidden[1][1])
    yb = reverse_valid(yr, lengths)
    Y_ref = jnp.concatenate([yf, yb], axis=-1)[:, :T_out]
    h_ref = jnp.stack([hf, hb], 0)
    c_ref = jnp.stack([cf, cb], 0)

    np.testing.assert_allclose(np.asarray(Y), np.asarray(Y_ref), rtol=1e-5, atol=1e-5)
    np.testing.assert_allclose(np.asarray(h_n), np.asarray(h_ref), rtol=1e-5, atol=1e-5)
    np.testing.assert_allclose(np.asarray(c_n), np.asarray(c_ref), rtol=1e-5, atol=1e-5)
    assert Y.shape == (B, T_out, H * num_dirs)
    assert h_n.shape == (num_dirs, B, H) and c_n.shape == (num_dirs, B, H)

    # ----- fast path (bf16 streamed gates + bf16 recurrent weights) -----
    Yb16, (hb16, cb16) = encoder_lstm_forward(params, ids, lengths, hidden)
    Yb16 = jax.block_until_ready(Yb16)
    hb16 = jax.block_until_ready(hb16)
    cb16 = jax.block_until_ready(cb16)
    # bf16 streaming/weights drift slightly vs the f32 reference -> loose tol.
    np.testing.assert_allclose(np.asarray(Yb16), np.asarray(Y_ref), rtol=2e-2, atol=2e-2)
    np.testing.assert_allclose(np.asarray(hb16), np.asarray(h_ref), rtol=2e-2, atol=2e-2)
    np.testing.assert_allclose(np.asarray(cb16), np.asarray(c_ref), rtol=2e-2, atol=2e-2)

    print("KERNEL_OK")
</pallas_src>

<mosaic_0001>
module attributes {stable_mosaic.version = 11 : i64} {
  func.func @_lstm_block_kernel(%arg0: i32, %arg1: memref<8x1xi32, #tpu.memory_space<vmem>>, %arg2: memref<8x8x256xf32, #tpu.memory_space<vmem>>, %arg3: memref<64x256xf32, #tpu.memory_space<vmem>>, %arg4: memref<8x64xf32, #tpu.memory_space<vmem>>, %arg5: memref<8x64xf32, #tpu.memory_space<vmem>>, %arg6: memref<1x8x512xf32, #tpu.memory_space<vmem>>, %arg7: memref<8x64xf32, #tpu.memory_space<vmem>>, %arg8: memref<8x64xf32, #tpu.memory_space<vmem>>, %arg9: memref<8x64xf32, #tpu.memory_space<vmem>>, %arg10: memref<8x64xf32, #tpu.memory_space<vmem>>) attributes {dimension_semantics = [#tpu.dimension_semantics<arbitrary>], iteration_bounds = array<i64: 1>, scalar_prefetch = 0 : i64, scratch_operands = 2 : i64, tpu.core_type = #tpu.core_type<tc>, window_params = [{pipeline_mode = #tpu.pipeline_mode<synchronous>, transform_indices = @transform_0, window_bounds = array<i64: 8, 1>}, {transform_indices = @transform_1, window_bounds = array<i64: 8, 8, 256>}, {pipeline_mode = #tpu.pipeline_mode<synchronous>, transform_indices = @transform_2, window_bounds = array<i64: 64, 256>}, {pipeline_mode = #tpu.pipeline_mode<synchronous>, transform_indices = @transform_3, window_bounds = array<i64: 8, 64>}, {pipeline_mode = #tpu.pipeline_mode<synchronous>, transform_indices = @transform_4, window_bounds = array<i64: 8, 64>}, {transform_indices = @transform_5, window_bounds = array<i64: 1, 8, 512>}, {pipeline_mode = #tpu.pipeline_mode<synchronous>, transform_indices = @transform_6, window_bounds = array<i64: 8, 64>}, {pipeline_mode = #tpu.pipeline_mode<synchronous>, transform_indices = @transform_7, window_bounds = array<i64: 8, 64>}]} {
    %c0_i32 = arith.constant 0 : i32
    %0 = arith.cmpi eq, %arg0, %c0_i32 : i32
    %1 = arith.extui %0 : i1 to i32
    %c0_i32_0 = arith.constant 0 : i32
    %2 = arith.cmpi ne, %1, %c0_i32_0 : i32
    scf.if %2 {
      %c0_72 = arith.constant 0 : index
      %c0_73 = arith.constant 0 : index
      %301 = vector.load %arg4[%c0_72, %c0_73] : memref<8x64xf32, #tpu.memory_space<vmem>>, vector<8x64xf32>
      %c0_74 = arith.constant 0 : index
      %c0_75 = arith.constant 0 : index
      %302 = vector.load %arg9[%c0_74, %c0_75] : memref<8x64xf32, #tpu.memory_space<vmem>>, vector<8x64xf32>
      tpu.vector_store %arg9[%c0_74, %c0_75], %301 {strides = array<i32>} : memref<8x64xf32, #tpu.memory_space<vmem>>, vector<8x64xf32>,
      %c0_76 = arith.constant 0 : index
      %c0_77 = arith.constant 0 : index
      %303 = vector.load %arg5[%c0_76, %c0_77] : memref<8x64xf32, #tpu.memory_space<vmem>>, vector<8x64xf32>
      %c0_78 = arith.constant 0 : index
      %c0_79 = arith.constant 0 : index
      %304 = vector.load %arg10[%c0_78, %c0_79] : memref<8x64xf32, #tpu.memory_space<vmem>>, vector<8x64xf32>
      tpu.vector_store %arg10[%c0_78, %c0_79], %303 {strides = array<i32>} : memref<8x64xf32, #tpu.memory_space<vmem>>, vector<8x64xf32>,
    } else {
    }
    %c0 = arith.constant 0 : index
    %c0_1 = arith.constant 0 : index
    %3 = vector.load %arg3[%c0, %c0_1] : memref<64x256xf32, #tpu.memory_space<vmem>>, vector<64x256xf32>
    %c0_2 = arith.constant 0 : index
    %c0_3 = arith.constant 0 : index
    %4 = vector.load %arg1[%c0_2, %c0_3] : memref<8x1xi32, #tpu.memory_space<vmem>>, vector<8x1xi32>
    %c8_i32 = arith.constant 8 : i32
    %5 = arith.muli %arg0, %c8_i32 : i32
    %c0_4 = arith.constant 0 : index
    %c0_5 = arith.constant 0 : index
    %6 = vector.load %arg9[%c0_4, %c0_5] : memref<8x64xf32, #tpu.memory_space<vmem>>, vector<8x64xf32>
    %c0_6 = arith.constant 0 : index
    %c0_7 = arith.constant 0 : index
    %7 = vector.load %arg10[%c0_6, %c0_7] : memref<8x64xf32, #tpu.memory_space<vmem>>, vector<8x64xf32>
    %c0_8 = arith.constant 0 : index
    %c0_9 = arith.constant 0 : index
    %c0_10 = arith.constant 0 : index
    %8 = vector.load %arg2[%c0_8, %c0_9, %c0_10] : memref<8x8x256xf32, #tpu.memory_space<vmem>>, vector<1x8x256xf32>
    %9 = vector.shape_cast %8 : vector<1x8x256xf32> to vector<8x256xf32>
    %cst = arith.constant dense<0.000000e+00> : vector<8x256xf32>
    %10 = tpu.matmul %6, %3, %cst {dimension_numbers = #tpu.dot_dimension_numbers<[1], [0], [0], [1], [0, 0, 1, 1], [], []>} : vector<8x64xf32>, vector<64x256xf32>, vector<8x256xf32> -> vector<8x256xf32>
    %11 = arith.addf %9, %10 : vector<8x256xf32>
    %12 = vector.extract_strided_slice %11 {offsets = [0, 0], sizes = [8, 192], strides = [1, 1]} : vector<8x256xf32> to vector<8x192xf32>
    %13 = arith.negf %12 : vector<8x192xf32>
    %14 = math.exp %13 : vector<8x192xf32>
    %cst_11 = arith.constant 1.000000e+00 : f32
    %15 = vector.broadcast %cst_11 : f32 to vector<8x192xf32>
    %16 = arith.addf %15, %14 : vector<8x192xf32>
    %17 = arith.divf %15, %16 : vector<8x192xf32>
    %18 = vector.extract_strided_slice %11 {offsets = [0, 192], sizes = [8, 64], strides = [1, 1]} : vector<8x256xf32> to vector<8x64xf32>
    %19 = math.tanh %18 : vector<8x64xf32>
    %20 = vector.extract_strided_slice %17 {offsets = [0, 64], sizes = [8, 64], strides = [1, 1]} : vector<8x192xf32> to vector<8x64xf32>
    %21 = arith.mulf %20, %7 : vector<8x64xf32>
    %22 = vector.extract_strided_slice %17 {offsets = [0, 0], sizes = [8, 64], strides = [1, 1]} : vector<8x192xf32> to vector<8x64xf32>
    %23 = arith.mulf %22, %19 : vector<8x64xf32>
    %24 = arith.addf %21, %23 : vector<8x64xf32>
    %25 = vector.extract_strided_slice %17 {offsets = [0, 128], sizes = [8, 64], strides = [1, 1]} : vector<8x192xf32> to vector<8x64xf32>
    %26 = math.tanh %24 : vector<8x64xf32>
    %27 = arith.mulf %25, %26 : vector<8x64xf32>
    %c0_i32_12 = arith.constant 0 : i32
    %28 = arith.addi %5, %c0_i32_12 : i32
    %29 = vector.broadcast %28 : i32 to vector<8x1xi32>
    %30 = arith.cmpi slt, %29, %4 : vector<8x1xi32>
    %31 = vector.shape_cast %30 : vector<8x1xi1> to vector<8x1xi1>
    %32 = vector.broadcast %31 : vector<8x1xi1> to vector<8x64xi1>
    %33 = arith.select %32, %27, %6 : vector<8x64xi1>, vector<8x64xf32>
    %34 = vector.shape_cast %30 : vector<8x1xi1> to vector<8x1xi1>
    %35 = vector.broadcast %34 : vector<8x1xi1> to vector<8x64xi1>
    %36 = arith.select %35, %24, %7 : vector<8x64xi1>, vector<8x64xf32>
    %cst_13 = arith.constant 0.000000e+00 : f32
    %37 = vector.shape_cast %30 : vector<8x1xi1> to vector<8x1xi1>
    %38 = vector.broadcast %37 : vector<8x1xi1> to vector<8x64xi1>
    %39 = vector.broadcast %cst_13 : f32 to vector<8x64xf32>
    %40 = arith.select %38, %27, %39 : vector<8x64xi1>, vector<8x64xf32>
    %c0_14 = arith.constant 0 : index
    %c0_15 = arith.constant 0 : index
    %c0_16 = arith.constant 0 : index
    %41 = vector.load %arg6[%c0_14, %c0_15, %c0_16] : memref<1x8x512xf32, #tpu.memory_space<vmem>>, vector<1x8x64xf32>
    %42 = vector.shape_cast %41 : vector<1x8x64xf32> to vector<8x64xf32>
    %43 = vector.shape_cast %40 : vector<8x64xf32> to vector<1x8x64xf32>
    tpu.vector_store %arg6[%c0_14, %c0_15, %c0_16], %43 {strides = array<i32>} : memref<1x8x512xf32, #tpu.memory_space<vmem>>, vector<1x8x64xf32>,
    %c1 = arith.constant 1 : index
    %c0_17 = arith.constant 0 : index
    %c0_18 = arith.constant 0 : index
    %44 = vector.load %arg2[%c1, %c0_17, %c0_18] : memref<8x8x256xf32, #tpu.memory_space<vmem>>, vector<1x8x256xf32>
    %45 = vector.shape_cast %44 : vector<1x8x256xf32> to vector<8x256xf32>
    %cst_19 = arith.constant dense<0.000000e+00> : vector<8x256xf32>
    %46 = tpu.matmul %33, %3, %cst_19 {dimension_numbers = #tpu.dot_dimension_numbers<[1], [0], [0], [1], [0, 0, 1, 1], [], []>} : vector<8x64xf32>, vector<64x256xf32>, vector<8x256xf32> -> vector<8x256xf32>
    %47 = arith.addf %45, %46 : vector<8x256xf32>
    %48 = vector.extract_strided_slice %47 {offsets = [0, 0], sizes = [8, 192], strides = [1, 1]} : vector<8x256xf32> to vector<8x192xf32>
    %49 = arith.negf %48 : vector<8x192xf32>
    %50 = math.exp %49 : vector<8x192xf32>
    %cst_20 = arith.constant 1.000000e+00 : f32
    %51 = vector.broadcast %cst_20 : f32 to vector<8x192xf32>
    %52 = arith.addf %51, %50 : vector<8x192xf32>
    %53 = arith.divf %51, %52 : vector<8x192xf32>
    %54 = vector.extract_strided_slice %47 {offsets = [0, 192], sizes = [8, 64], strides = [1, 1]} : vector<8x256xf32> to vector<8x64xf32>
    %55 = math.tanh %54 : vector<8x64xf32>
    %56 = vector.extract_strided_slice %53 {offsets = [0, 64], sizes = [8, 64], strides = [1, 1]} : vector<8x192xf32> to vector<8x64xf32>
    %57 = arith.mulf %56, %36 : vector<8x64xf32>
    %58 = vector.extract_strided_slice %53 {offsets = [0, 0], sizes = [8, 64], strides = [1, 1]} : vector<8x192xf32> to vector<8x64xf32>
    %59 = arith.mulf %58, %55 : vector<8x64xf32>
    %60 = arith.addf %57, %59 : vector<8x64xf32>
    %61 = vector.extract_strided_slice %53 {offsets = [0, 128], sizes = [8, 64], strides = [1, 1]} : vector<8x192xf32> to vector<8x64xf32>
    %62 = math.tanh %60 : vector<8x64xf32>
    %63 = arith.mulf %61, %62 : vector<8x64xf32>
    %c1_i32 = arith.constant 1 : i32
    %64 = arith.addi %5, %c1_i32 : i32
    %65 = vector.broadcast %64 : i32 to vector<8x1xi32>
    %66 = arith.cmpi slt, %65, %4 : vector<8x1xi32>
    %67 = vector.shape_cast %66 : vector<8x1xi1> to vector<8x1xi1>
    %68 = vector.broadcast %67 : vector<8x1xi1> to vector<8x64xi1>
    %69 = arith.select %68, %63, %33 : vector<8x64xi1>, vector<8x64xf32>
    %70 = vector.shape_cast %66 : vector<8x1xi1> to vector<8x1xi1>
    %71 = vector.broadcast %70 : vector<8x1xi1> to vector<8x64xi1>
    %72 = arith.select %71, %60, %36 : vector<8x64xi1>, vector<8x64xf32>
    %cst_21 = arith.constant 0.000000e+00 : f32
    %73 = vector.shape_cast %66 : vector<8x1xi1> to vector<8x1xi1>
    %74 = vector.broadcast %73 : vector<8x1xi1> to vector<8x64xi1>
    %75 = vector.broadcast %cst_21 : f32 to vector<8x64xf32>
    %76 = arith.select %74, %63, %75 : vector<8x64xi1>, vector<8x64xf32>
    %c0_22 = arith.constant 0 : index
    %c0_23 = arith.constant 0 : index
    %c64 = arith.constant 64 : index
    %77 = vector.load %arg6[%c0_22, %c0_23, %c64] : memref<1x8x512xf32, #tpu.memory_space<vmem>>, vector<1x8x64xf32>
    %78 = vector.shape_cast %77 : vector<1x8x64xf32> to vector<8x64xf32>
    %79 = vector.shape_cast %76 : vector<8x64xf32> to vector<1x8x64xf32>
    tpu.vector_store %arg6[%c0_22, %c0_23, %c64], %79 {strides = array<i32>} : memref<1x8x512xf32, #tpu.memory_space<vmem>>, vector<1x8x64xf32>,
    %c2 = arith.constant 2 : index
    %c0_24 = arith.constant 0 : index
    %c0_25 = arith.constant 0 : index
    %80 = vector.load %arg2[%c2, %c0_24, %c0_25] : memref<8x8x256xf32, #tpu.memory_space<vmem>>, vector<1x8x256xf32>
    %81 = vector.shape_cast %80 : vector<1x8x256xf32> to vector<8x256xf32>
    %cst_26 = arith.constant dense<0.000000e+00> : vector<8x256xf32>
    %82 = tpu.matmul %69, %3, %cst_26 {dimension_numbers = #tpu.dot_dimension_numbers<[1], [0], [0], [1], [0, 0, 1, 1], [], []>} : vector<8x64xf32>, vector<64x256xf32>, vector<8x256xf32> -> vector<8x256xf32>
    %83 = arith.addf %81, %82 : vector<8x256xf32>
    %84 = vector.extract_strided_slice %83 {offsets = [0, 0], sizes = [8, 192], strides = [1, 1]} : vector<8x256xf32> to vector<8x192xf32>
    %85 = arith.negf %84 : vector<8x192xf32>
    %86 = math.exp %85 : vector<8x192xf32>
    %cst_27 = arith.constant 1.000000e+00 : f32
    %87 = vector.broadcast %cst_27 : f32 to vector<8x192xf32>
    %88 = arith.addf %87, %86 : vector<8x192xf32>
    %89 = arith.divf %87, %88 : vector<8x192xf32>
    %90 = vector.extract_strided_slice %83 {offsets = [0, 192], sizes = [8, 64], strides = [1, 1]} : vector<8x256xf32> to vector<8x64xf32>
    %91 = math.tanh %90 : vector<8x64xf32>
    %92 = vector.extract_strided_slice %89 {offsets = [0, 64], sizes = [8, 64], strides = [1, 1]} : vector<8x192xf32> to vector<8x64xf32>
    %93 = arith.mulf %92, %72 : vector<8x64xf32>
    %94 = vector.extract_strided_slice %89 {offsets = [0, 0], sizes = [8, 64], strides = [1, 1]} : vector<8x192xf32> to vector<8x64xf32>
    %95 = arith.mulf %94, %91 : vector<8x64xf32>
    %96 = arith.addf %93, %95 : vector<8x64xf32>
    %97 = vector.extract_strided_slice %89 {offsets = [0, 128], sizes = [8, 64], strides = [1, 1]} : vector<8x192xf32> to vector<8x64xf32>
    %98 = math.tanh %96 : vector<8x64xf32>
    %99 = arith.mulf %97, %98 : vector<8x64xf32>
    %c2_i32 = arith.constant 2 : i32
    %100 = arith.addi %5, %c2_i32 : i32
    %101 = vector.broadcast %100 : i32 to vector<8x1xi32>
    %102 = arith.cmpi slt, %101, %4 : vector<8x1xi32>
    %103 = vector.shape_cast %102 : vector<8x1xi1> to vector<8x1xi1>
    %104 = vector.broadcast %103 : vector<8x1xi1> to vector<8x64xi1>
    %105 = arith.select %104, %99, %69 : vector<8x64xi1>, vector<8x64xf32>
    %106 = vector.shape_cast %102 : vector<8x1xi1> to vector<8x1xi1>
    %107 = vector.broadcast %106 : vector<8x1xi1> to vector<8x64xi1>
    %108 = arith.select %107, %96, %72 : vector<8x64xi1>, vector<8x64xf32>
    %cst_28 = arith.constant 0.000000e+00 : f32
    %109 = vector.shape_cast %102 : vector<8x1xi1> to vector<8x1xi1>
    %110 = vector.broadcast %109 : vector<8x1xi1> to vector<8x64xi1>
    %111 = vector.broadcast %cst_28 : f32 to vector<8x64xf32>
    %112 = arith.select %110, %99, %111 : vector<8x64xi1>, vector<8x64xf32>
    %c0_29 = arith.constant 0 : index
    %c0_30 = arith.constant 0 : index
    %c128 = arith.constant 128 : index
    %113 = vector.load %arg6[%c0_29, %c0_30, %c128] : memref<1x8x512xf32, #tpu.memory_space<vmem>>, vector<1x8x64xf32>
    %114 = vector.shape_cast %113 : vector<1x8x64xf32> to vector<8x64xf32>
    %115 = vector.shape_cast %112 : vector<8x64xf32> to vector<1x8x64xf32>
    tpu.vector_store %arg6[%c0_29, %c0_30, %c128], %115 {strides = array<i32>} : memref<1x8x512xf32, #tpu.memory_space<vmem>>, vector<1x8x64xf32>,
    %c3 = arith.constant 3 : index
    %c0_31 = arith.constant 0 : index
    %c0_32 = arith.constant 0 : index
    %116 = vector.load %arg2[%c3, %c0_31, %c0_32] : memref<8x8x256xf32, #tpu.memory_space<vmem>>, vector<1x8x256xf32>
    %117 = vector.shape_cast %116 : vector<1x8x256xf32> to vector<8x256xf32>
    %cst_33 = arith.constant dense<0.000000e+00> : vector<8x256xf32>
    %118 = tpu.matmul %105, %3, %cst_33 {dimension_numbers = #tpu.dot_dimension_numbers<[1], [0], [0], [1], [0, 0, 1, 1], [], []>} : vector<8x64xf32>, vector<64x256xf32>, vector<8x256xf32> -> vector<8x256xf32>
    %119 = arith.addf %117, %118 : vector<8x256xf32>
    %120 = vector.extract_strided_slice %119 {offsets = [0, 0], sizes = [8, 192], strides = [1, 1]} : vector<8x256xf32> to vector<8x192xf32>
    %121 = arith.negf %120 : vector<8x192xf32>
    %122 = math.exp %121 : vector<8x192xf32>
    %cst_34 = arith.constant 1.000000e+00 : f32
    %123 = vector.broadcast %cst_34 : f32 to vector<8x192xf32>
    %124 = arith.addf %123, %122 : vector<8x192xf32>
    %125 = arith.divf %123, %124 : vector<8x192xf32>
    %126 = vector.extract_strided_slice %119 {offsets = [0, 192], sizes = [8, 64], strides = [1, 1]} : vector<8x256xf32> to vector<8x64xf32>
    %127 = math.tanh %126 : vector<8x64xf32>
    %128 = vector.extract_strided_slice %125 {offsets = [0, 64], sizes = [8, 64], strides = [1, 1]} : vector<8x192xf32> to vector<8x64xf32>
    %129 = arith.mulf %128, %108 : vector<8x64xf32>
    %130 = vector.extract_strided_slice %125 {offsets = [0, 0], sizes = [8, 64], strides = [1, 1]} : vector<8x192xf32> to vector<8x64xf32>
    %131 = arith.mulf %130, %127 : vector<8x64xf32>
    %132 = arith.addf %129, %131 : vector<8x64xf32>
    %133 = vector.extract_strided_slice %125 {offsets = [0, 128], sizes = [8, 64], strides = [1, 1]} : vector<8x192xf32> to vector<8x64xf32>
    %134 = math.tanh %132 : vector<8x64xf32>
    %135 = arith.mulf %133, %134 : vector<8x64xf32>
    %c3_i32 = arith.constant 3 : i32
    %136 = arith.addi %5, %c3_i32 : i32
    %137 = vector.broadcast %136 : i32 to vector<8x1xi32>
    %138 = arith.cmpi slt, %137, %4 : vector<8x1xi32>
    %139 = vector.shape_cast %138 : vector<8x1xi1> to vector<8x1xi1>
    %140 = vector.broadcast %139 : vector<8x1xi1> to vector<8x64xi1>
    %141 = arith.select %140, %135, %105 : vector<8x64xi1>, vector<8x64xf32>
    %142 = vector.shape_cast %138 : vector<8x1xi1> to vector<8x1xi1>
    %143 = vector.broadcast %142 : vector<8x1xi1> to vector<8x64xi1>
    %144 = arith.select %143, %132, %108 : vector<8x64xi1>, vector<8x64xf32>
    %cst_35 = arith.constant 0.000000e+00 : f32
    %145 = vector.shape_cast %138 : vector<8x1xi1> to vector<8x1xi1>
    %146 = vector.broadcast %145 : vector<8x1xi1> to vector<8x64xi1>
    %147 = vector.broadcast %cst_35 : f32 to vector<8x64xf32>
    %148 = arith.select %146, %135, %147 : vector<8x64xi1>, vector<8x64xf32>
    %c0_36 = arith.constant 0 : index
    %c0_37 = arith.constant 0 : index
    %c192 = arith.constant 192 : index
    %149 = vector.load %arg6[%c0_36, %c0_37, %c192] : memref<1x8x512xf32, #tpu.memory_space<vmem>>, vector<1x8x64xf32>
    %150 = vector.shape_cast %149 : vector<1x8x64xf32> to vector<8x64xf32>
    %151 = vector.shape_cast %148 : vector<8x64xf32> to vector<1x8x64xf32>
    tpu.vector_store %arg6[%c0_36, %c0_37, %c192], %151 {strides = array<i32>} : memref<1x8x512xf32, #tpu.memory_space<vmem>>, vector<1x8x64xf32>,
    %c4 = arith.constant 4 : index
    %c0_38 = arith.constant 0 : index
    %c0_39 = arith.constant 0 : index
    %152 = vector.load %arg2[%c4, %c0_38, %c0_39] : memref<8x8x256xf32, #tpu.memory_space<vmem>>, vector<1x8x256xf32>
    %153 = vector.shape_cast %152 : vector<1x8x256xf32> to vector<8x256xf32>
    %cst_40 = arith.constant dense<0.000000e+00> : vector<8x256xf32>
    %154 = tpu.matmul %141, %3, %cst_40 {dimension_numbers = #tpu.dot_dimension_numbers<[1], [0], [0], [1], [0, 0, 1, 1], [], []>} : vector<8x64xf32>, vector<64x256xf32>, vector<8x256xf32> -> vector<8x256xf32>
    %155 = arith.addf %153, %154 : vector<8x256xf32>
    %156 = vector.extract_strided_slice %155 {offsets = [0, 0], sizes = [8, 192], strides = [1, 1]} : vector<8x256xf32> to vector<8x192xf32>
    %157 = arith.negf %156 : vector<8x192xf32>
    %158 = math.exp %157 : vector<8x192xf32>
    %cst_41 = arith.constant 1.000000e+00 : f32
    %159 = vector.broadcast %cst_41 : f32 to vector<8x192xf32>
    %160 = arith.addf %159, %158 : vector<8x192xf32>
    %161 = arith.divf %159, %160 : vector<8x192xf32>
    %162 = vector.extract_strided_slice %155 {offsets = [0, 192], sizes = [8, 64], strides = [1, 1]} : vector<8x256xf32> to vector<8x64xf32>
    %163 = math.tanh %162 : vector<8x64xf32>
    %164 = vector.extract_strided_slice %161 {offsets = [0, 64], sizes = [8, 64], strides = [1, 1]} : vector<8x192xf32> to vector<8x64xf32>
    %165 = arith.mulf %164, %144 : vector<8x64xf32>
    %166 = vector.extract_strided_slice %161 {offsets = [0, 0], sizes = [8, 64], strides = [1, 1]} : vector<8x192xf32> to vector<8x64xf32>
    %167 = arith.mulf %166, %163 : vector<8x64xf32>
    %168 = arith.addf %165, %167 : vector<8x64xf32>
    %169 = vector.extract_strided_slice %161 {offsets = [0, 128], sizes = [8, 64], strides = [1, 1]} : vector<8x192xf32> to vector<8x64xf32>
    %170 = math.tanh %168 : vector<8x64xf32>
    %171 = arith.mulf %169, %170 : vector<8x64xf32>
    %c4_i32 = arith.constant 4 : i32
    %172 = arith.addi %5, %c4_i32 : i32
    %173 = vector.broadcast %172 : i32 to vector<8x1xi32>
    %174 = arith.cmpi slt, %173, %4 : vector<8x1xi32>
    %175 = vector.shape_cast %174 : vector<8x1xi1> to vector<8x1xi1>
    %176 = vector.broadcast %175 : vector<8x1xi1> to vector<8x64xi1>
    %177 = arith.select %176, %171, %141 : vector<8x64xi1>, vector<8x64xf32>
    %178 = vector.shape_cast %174 : vector<8x1xi1> to vector<8x1xi1>
    %179 = vector.broadcast %178 : vector<8x1xi1> to vector<8x64xi1>
    %180 = arith.select %179, %168, %144 : vector<8x64xi1>, vector<8x64xf32>
    %cst_42 = arith.constant 0.000000e+00 : f32
    %181 = vector.shape_cast %174 : vector<8x1xi1> to vector<8x1xi1>
    %182 = vector.broadcast %181 : vector<8x1xi1> to vector<8x64xi1>
    %183 = vector.broadcast %cst_42 : f32 to vector<8x64xf32>
    %184 = arith.select %182, %171, %183 : vector<8x64xi1>, vector<8x64xf32>
    %c0_43 = arith.constant 0 : index
    %c0_44 = arith.constant 0 : index
    %c256 = arith.constant 256 : index
    %185 = vector.load %arg6[%c0_43, %c0_44, %c256] : memref<1x8x512xf32, #tpu.memory_space<vmem>>, vector<1x8x64xf32>
    %186 = vector.shape_cast %185 : vector<1x8x64xf32> to vector<8x64xf32>
    %187 = vector.shape_cast %184 : vector<8x64xf32> to vector<1x8x64xf32>
    tpu.vector_store %arg6[%c0_43, %c0_44, %c256], %187 {strides = array<i32>} : memref<1x8x512xf32, #tpu.memory_space<vmem>>, vector<1x8x64xf32>,
    %c5 = arith.constant 5 : index
    %c0_45 = arith.constant 0 : index
    %c0_46 = arith.constant 0 : index
    %188 = vector.load %arg2[%c5, %c0_45, %c0_46] : memref<8x8x256xf32, #tpu.memory_space<vmem>>, vector<1x8x256xf32>
    %189 = vector.shape_cast %188 : vector<1x8x256xf32> to vector<8x256xf32>
    %cst_47 = arith.constant dense<0.000000e+00> : vector<8x256xf32>
    %190 = tpu.matmul %177, %3, %cst_47 {dimension_numbers = #tpu.dot_dimension_numbers<[1], [0], [0], [1], [0, 0, 1, 1], [], []>} : vector<8x64xf32>, vector<64x256xf32>, vector<8x256xf32> -> vector<8x256xf32>
    %191 = arith.addf %189, %190 : vector<8x256xf32>
    %192 = vector.extract_strided_slice %191 {offsets = [0, 0], sizes = [8, 192], strides = [1, 1]} : vector<8x256xf32> to vector<8x192xf32>
    %193 = arith.negf %192 : vector<8x192xf32>
    %194 = math.exp %193 : vector<8x192xf32>
    %cst_48 = arith.constant 1.000000e+00 : f32
    %195 = vector.broadcast %cst_48 : f32 to vector<8x192xf32>
    %196 = arith.addf %195, %194 : vector<8x192xf32>
    %197 = arith.divf %195, %196 : vector<8x192xf32>
    %198 = vector.extract_strided_slice %191 {offsets = [0, 192], sizes = [8, 64], strides = [1, 1]} : vector<8x256xf32> to vector<8x64xf32>
    %199 = math.tanh %198 : vector<8x64xf32>
    %200 = vector.extract_strided_slice %197 {offsets = [0, 64], sizes = [8, 64], strides = [1, 1]} : vector<8x192xf32> to vector<8x64xf32>
    %201 = arith.mulf %200, %180 : vector<8x64xf32>
    %202 = vector.extract_strided_slice %197 {offsets = [0, 0], sizes = [8, 64], strides = [1, 1]} : vector<8x192xf32> to vector<8x64xf32>
    %203 = arith.mulf %202, %199 : vector<8x64xf32>
    %204 = arith.addf %201, %203 : vector<8x64xf32>
    %205 = vector.extract_strided_slice %197 {offsets = [0, 128], sizes = [8, 64], strides = [1, 1]} : vector<8x192xf32> to vector<8x64xf32>
    %206 = math.tanh %204 : vector<8x64xf32>
    %207 = arith.mulf %205, %206 : vector<8x64xf32>
    %c5_i32 = arith.constant 5 : i32
    %208 = arith.addi %5, %c5_i32 : i32
    %209 = vector.broadcast %208 : i32 to vector<8x1xi32>
    %210 = arith.cmpi slt, %209, %4 : vector<8x1xi32>
    %211 = vector.shape_cast %210 : vector<8x1xi1> to vector<8x1xi1>
    %212 = vector.broadcast %211 : vector<8x1xi1> to vector<8x64xi1>
    %213 = arith.select %212, %207, %177 : vector<8x64xi1>, vector<8x64xf32>
    %214 = vector.shape_cast %210 : vector<8x1xi1> to vector<8x1xi1>
    %215 = vector.broadcast %214 : vector<8x1xi1> to vector<8x64xi1>
    %216 = arith.select %215, %204, %180 : vector<8x64xi1>, vector<8x64xf32>
    %cst_49 = arith.constant 0.000000e+00 : f32
    %217 = vector.shape_cast %210 : vector<8x1xi1> to vector<8x1xi1>
    %218 = vector.broadcast %217 : vector<8x1xi1> to vector<8x64xi1>
    %219 = vector.broadcast %cst_49 : f32 to vector<8x64xf32>
    %220 = arith.select %218, %207, %219 : vector<8x64xi1>, vector<8x64xf32>
    %c0_50 = arith.constant 0 : index
    %c0_51 = arith.constant 0 : index
    %c320 = arith.constant 320 : index
    %221 = vector.load %arg6[%c0_50, %c0_51, %c320] : memref<1x8x512xf32, #tpu.memory_space<vmem>>, vector<1x8x64xf32>
    %222 = vector.shape_cast %221 : vector<1x8x64xf32> to vector<8x64xf32>
    %223 = vector.shape_cast %220 : vector<8x64xf32> to vector<1x8x64xf32>
    tpu.vector_store %arg6[%c0_50, %c0_51, %c320], %223 {strides = array<i32>} : memref<1x8x512xf32, #tpu.memory_space<vmem>>, vector<1x8x64xf32>,
    %c6 = arith.constant 6 : index
    %c0_52 = arith.constant 0 : index
    %c0_53 = arith.constant 0 : index
    %224 = vector.load %arg2[%c6, %c0_52, %c0_53] : memref<8x8x256xf32, #tpu.memory_space<vmem>>, vector<1x8x256xf32>
    %225 = vector.shape_cast %224 : vector<1x8x256xf32> to vector<8x256xf32>
    %cst_54 = arith.constant dense<0.000000e+00> : vector<8x256xf32>
    %226 = tpu.matmul %213, %3, %cst_54 {dimension_numbers = #tpu.dot_dimension_numbers<[1], [0], [0], [1], [0, 0, 1, 1], [], []>} : vector<8x64xf32>, vector<64x256xf32>, vector<8x256xf32> -> vector<8x256xf32>
    %227 = arith.addf %225, %226 : vector<8x256xf32>
    %228 = vector.extract_strided_slice %227 {offsets = [0, 0], sizes = [8, 192], strides = [1, 1]} : vector<8x256xf32> to vector<8x192xf32>
    %229 = arith.negf %228 : vector<8x192xf32>
    %230 = math.exp %229 : vector<8x192xf32>
    %cst_55 = arith.constant 1.000000e+00 : f32
    %231 = vector.broadcast %cst_55 : f32 to vector<8x192xf32>
    %232 = arith.addf %231, %230 : vector<8x192xf32>
    %233 = arith.divf %231, %232 : vector<8x192xf32>
    %234 = vector.extract_strided_slice %227 {offsets = [0, 192], sizes = [8, 64], strides = [1, 1]} : vector<8x256xf32> to vector<8x64xf32>
    %235 = math.tanh %234 : vector<8x64xf32>
    %236 = vector.extract_strided_slice %233 {offsets = [0, 64], sizes = [8, 64], strides = [1, 1]} : vector<8x192xf32> to vector<8x64xf32>
    %237 = arith.mulf %236, %216 : vector<8x64xf32>
    %238 = vector.extract_strided_slice %233 {offsets = [0, 0], sizes = [8, 64], strides = [1, 1]} : vector<8x192xf32> to vector<8x64xf32>
    %239 = arith.mulf %238, %235 : vector<8x64xf32>
    %240 = arith.addf %237, %239 : vector<8x64xf32>
    %241 = vector.extract_strided_slice %233 {offsets = [0, 128], sizes = [8, 64], strides = [1, 1]} : vector<8x192xf32> to vector<8x64xf32>
    %242 = math.tanh %240 : vector<8x64xf32>
    %243 = arith.mulf %241, %242 : vector<8x64xf32>
    %c6_i32 = arith.constant 6 : i32
    %244 = arith.addi %5, %c6_i32 : i32
    %245 = vector.broadcast %244 : i32 to vector<8x1xi32>
    %246 = arith.cmpi slt, %245, %4 : vector<8x1xi32>
    %247 = vector.shape_cast %246 : vector<8x1xi1> to vector<8x1xi1>
    %248 = vector.broadcast %247 : vector<8x1xi1> to vector<8x64xi1>
    %249 = arith.select %248, %243, %213 : vector<8x64xi1>, vector<8x64xf32>
    %250 = vector.shape_cast %246 : vector<8x1xi1> to vector<8x1xi1>
    %251 = vector.broadcast %250 : vector<8x1xi1> to vector<8x64xi1>
    %252 = arith.select %251, %240, %216 : vector<8x64xi1>, vector<8x64xf32>
    %cst_56 = arith.constant 0.000000e+00 : f32
    %253 = vector.shape_cast %246 : vector<8x1xi1> to vector<8x1xi1>
    %254 = vector.broadcast %253 : vector<8x1xi1> to vector<8x64xi1>
    %255 = vector.broadcast %cst_56 : f32 to vector<8x64xf32>
    %256 = arith.select %254, %243, %255 : vector<8x64xi1>, vector<8x64xf32>
    %c0_57 = arith.constant 0 : index
    %c0_58 = arith.constant 0 : index
    %c384 = arith.constant 384 : index
    %257 = vector.load %arg6[%c0_57, %c0_58, %c384] : memref<1x8x512xf32, #tpu.memory_space<vmem>>, vector<1x8x64xf32>
    %258 = vector.shape_cast %257 : vector<1x8x64xf32> to vector<8x64xf32>
    %259 = vector.shape_cast %256 : vector<8x64xf32> to vector<1x8x64xf32>
    tpu.vector_store %arg6[%c0_57, %c0_58, %c384], %259 {strides = array<i32>} : memref<1x8x512xf32, #tpu.memory_space<vmem>>, vector<1x8x64xf32>,
    %c7 = arith.constant 7 : index
    %c0_59 = arith.constant 0 : index
    %c0_60 = arith.constant 0 : index
    %260 = vector.load %arg2[%c7, %c0_59, %c0_60] : memref<8x8x256xf32, #tpu.memory_space<vmem>>, vector<1x8x256xf32>
    %261 = vector.shape_cast %260 : vector<1x8x256xf32> to vector<8x256xf32>
    %cst_61 = arith.constant dense<0.000000e+00> : vector<8x256xf32>
    %262 = tpu.matmul %249, %3, %cst_61 {dimension_numbers = #tpu.dot_dimension_numbers<[1], [0], [0], [1], [0, 0, 1, 1], [], []>} : vector<8x64xf32>, vector<64x256xf32>, vector<8x256xf32> -> vector<8x256xf32>
    %263 = arith.addf %261, %262 : vector<8x256xf32>
    %264 = vector.extract_strided_slice %263 {offsets = [0, 0], sizes = [8, 192], strides = [1, 1]} : vector<8x256xf32> to vector<8x192xf32>
    %265 = arith.negf %264 : vector<8x192xf32>
    %266 = math.exp %265 : vector<8x192xf32>
    %cst_62 = arith.constant 1.000000e+00 : f32
    %267 = vector.broadcast %cst_62 : f32 to vector<8x192xf32>
    %268 = arith.addf %267, %266 : vector<8x192xf32>
    %269 = arith.divf %267, %268 : vector<8x192xf32>
    %270 = vector.extract_strided_slice %263 {offsets = [0, 192], sizes = [8, 64], strides = [1, 1]} : vector<8x256xf32> to vector<8x64xf32>
    %271 = math.tanh %270 : vector<8x64xf32>
    %272 = vector.extract_strided_slice %269 {offsets = [0, 64], sizes = [8, 64], strides = [1, 1]} : vector<8x192xf32> to vector<8x64xf32>
    %273 = arith.mulf %272, %252 : vector<8x64xf32>
    %274 = vector.extract_strided_slice %269 {offsets = [0, 0], sizes = [8, 64], strides = [1, 1]} : vector<8x192xf32> to vector<8x64xf32>
    %275 = arith.mulf %274, %271 : vector<8x64xf32>
    %276 = arith.addf %273, %275 : vector<8x64xf32>
    %277 = vector.extract_strided_slice %269 {offsets = [0, 128], sizes = [8, 64], strides = [1, 1]} : vector<8x192xf32> to vector<8x64xf32>
    %278 = math.tanh %276 : vector<8x64xf32>
    %279 = arith.mulf %277, %278 : vector<8x64xf32>
    %c7_i32 = arith.constant 7 : i32
    %280 = arith.addi %5, %c7_i32 : i32
    %281 = vector.broadcast %280 : i32 to vector<8x1xi32>
    %282 = arith.cmpi slt, %281, %4 : vector<8x1xi32>
    %283 = vector.shape_cast %282 : vector<8x1xi1> to vector<8x1xi1>
    %284 = vector.broadcast %283 : vector<8x1xi1> to vector<8x64xi1>
    %285 = arith.select %284, %279, %249 : vector<8x64xi1>, vector<8x64xf32>
    %286 = vector.shape_cast %282 : vector<8x1xi1> to vector<8x1xi1>
    %287 = vector.broadcast %286 : vector<8x1xi1> to vector<8x64xi1>
    %288 = arith.select %287, %276, %252 : vector<8x64xi1>, vector<8x64xf32>
    %cst_63 = arith.constant 0.000000e+00 : f32
    %289 = vector.shape_cast %282 : vector<8x1xi1> to vector<8x1xi1>
    %290 = vector.broadcast %289 : vector<8x1xi1> to vector<8x64xi1>
    %291 = vector.broadcast %cst_63 : f32 to vector<8x64xf32>
    %292 = arith.select %290, %279, %291 : vector<8x64xi1>, vector<8x64xf32>
    %c0_64 = arith.constant 0 : index
    %c0_65 = arith.constant 0 : index
    %c448 = arith.constant 448 : index
    %293 = vector.load %arg6[%c0_64, %c0_65, %c448] : memref<1x8x512xf32, #tpu.memory_space<vmem>>, vector<1x8x64xf32>
    %294 = vector.shape_cast %293 : vector<1x8x64xf32> to vector<8x64xf32>
    %295 = vector.shape_cast %292 : vector<8x64xf32> to vector<1x8x64xf32>
    tpu.vector_store %arg6[%c0_64, %c0_65, %c448], %295 {strides = array<i32>} : memref<1x8x512xf32, #tpu.memory_space<vmem>>, vector<1x8x64xf32>,
    %c0_66 = arith.constant 0 : index
    %c0_67 = arith.constant 0 : index
    %296 = vector.load %arg9[%c0_66, %c0_67] : memref<8x64xf32, #tpu.memory_space<vmem>>, vector<8x64xf32>
    tpu.vector_store %arg9[%c0_66, %c0_67], %285 {strides = array<i32>} : memref<8x64xf32, #tpu.memory_space<vmem>>, vector<8x64xf32>,
    %c0_68 = arith.constant 0 : index
    %c0_69 = arith.constant 0 : index
    %297 = vector.load %arg10[%c0_68, %c0_69] : memref<8x64xf32, #tpu.memory_space<vmem>>, vector<8x64xf32>
    tpu.vector_store %arg10[%c0_68, %c0_69], %288 {strides = array<i32>} : memref<8x64xf32, #tpu.memory_space<vmem>>, vector<8x64xf32>,
    %c0_i32_70 = arith.constant 0 : i32
    %298 = arith.cmpi eq, %arg0, %c0_i32_70 : i32
    %299 = arith.extui %298 : i1 to i32
    %c0_i32_71 = arith.constant 0 : i32
    %300 = arith.cmpi ne, %299, %c0_i32_71 : i32
    scf.if %300 {
      %c0_72 = arith.constant 0 : index
      %c0_73 = arith.constant 0 : index
      %301 = vector.load %arg7[%c0_72, %c0_73] : memref<8x64xf32, #tpu.memory_space<vmem>>, vector<8x64xf32>
      tpu.vector_store %arg7[%c0_72, %c0_73], %285 {strides = array<i32>} : memref<8x64xf32, #tpu.memory_space<vmem>>, vector<8x64xf32>,
      %c0_74 = arith.constant 0 : index
      %c0_75 = arith.constant 0 : index
      %302 = vector.load %arg8[%c0_74, %c0_75] : memref<8x64xf32, #tpu.memory_space<vmem>>, vector<8x64xf32>
      tpu.vector_store %arg8[%c0_74, %c0_75], %288 {strides = array<i32>} : memref<8x64xf32, #tpu.memory_space<vmem>>, vector<8x64xf32>,
    } else {
    }
    return
  }
  func.func @transform_0(%arg0: i32) -> (i32, i32) {
    %c0_i32 = arith.constant 0 : i32
    %c0_i32_0 = arith.constant 0 : i32
    %c0_i32_1 = arith.constant 0 : i32
    return %c0_i32, %c0_i32_0 : i32, i32
  }
  func.func @transform_1(%arg0: i32) -> (i32, i32, i32) {
    %c0_i32 = arith.constant 0 : i32
    %c0_i32_0 = arith.constant 0 : i32
    %c0_i32_1 = arith.constant 0 : i32
    return %arg0, %c0_i32, %c0_i32_0 : i32, i32, i32
  }
  func.func @transform_2(%arg0: i32) -> (i32, i32) {
    %c0_i32 = arith.constant 0 : i32
    %c0_i32_0 = arith.constant 0 : i32
    %c0_i32_1 = arith.constant 0 : i32
    return %c0_i32, %c0_i32_0 : i32, i32
  }
  func.func @transform_3(%arg0: i32) -> (i32, i32) {
    %c0_i32 = arith.constant 0 : i32
    %c0_i32_0 = arith.constant 0 : i32
    %c0_i32_1 = arith.constant 0 : i32
    return %c0_i32, %c0_i32_0 : i32, i32
  }
  func.func @transform_4(%arg0: i32) -> (i32, i32) {
    %c0_i32 = arith.constant 0 : i32
    %c0_i32_0 = arith.constant 0 : i32
    %c0_i32_1 = arith.constant 0 : i32
    return %c0_i32, %c0_i32_0 : i32, i32
  }
  func.func @transform_5(%arg0: i32) -> (i32, i32, i32) {
    %c0_i32 = arith.constant 0 : i32
    %c0_i32_0 = arith.constant 0 : i32
    %c0_i32_1 = arith.constant 0 : i32
    return %arg0, %c0_i32, %c0_i32_0 : i32, i32, i32
  }
  func.func @transform_6(%arg0: i32) -> (i32, i32) {
    %c0_i32 = arith.constant 0 : i32
    %c0_i32_0 = arith.constant 0 : i32
    %c0_i32_1 = arith.constant 0 : i32
    return %c0_i32, %c0_i32_0 : i32, i32
  }
  func.func @transform_7(%arg0: i32) -> (i32, i32) {
    %c0_i32 = arith.constant 0 : i32
    %c0_i32_0 = arith.constant 0 : i32
    %c0_i32_1 = arith.constant 0 : i32
    return %c0_i32, %c0_i32_0 : i32, i32
  }
}

</mosaic_0001>

<bundles_post_ra>
// kernel: tpu_custom_call.1
= control target key start
LH: loop header
LB: loop body
LE: loop exit
PB: predicated region body
PF: predicated region fallthrough
CT: control target
= control target key end

     0   :  { %13 = vsyncpa [#allocation5], 0  ;;  %s1848_s0 = inlined_call_operand.vmem [shape: s32[8,1], index: 0, kind: input, shape index: {}]   ;;  %s1849_s1 = inlined_call_operand.hbm [shape: f32[8,8,256], index: 1, kind: input, shape index: {}]   ;;  %s1850_s2 = inlined_call_operand.hbm [shape: f32[64,256], index: 2, kind: input, shape index: {}]   ;;  %s1851_s3 = inlined_call_operand.vmem [shape: f32[8,64], index: 3, kind: input, shape index: {}]   ;;  %s1852_s4 = inlined_call_operand.vmem [shape: f32[8,64], index: 4, kind: input, shape index: {}]   ;;  %s1853_s5 = inlined_call_operand.hbm [shape: f32[1,8,512], index: 5, kind: output, shape index: {0}]   ;;  %s1854_s6 = inlined_call_operand.hbm [shape: f32[8,64], index: 6, kind: output, shape index: {1}]   ;;  %s1855_s7 = inlined_call_operand.hbm [shape: f32[8,64], index: 7, kind: output, shape index: {2}]  }
   0x1   :  { %14 = vsyncpa [#allocation8], 0 }
   0x2   :  { %15 = vsyncpa [#allocation6], 0 }
   0x3   :  { %16 = vsyncpa [#allocation11], 0  ;;  %s1510_s24 = smov [#allocation4]   ;;  %s1392_s28 = scalar_lea.hbm %s1849_s1, 2048 }
   0x4   :  { %s24_s25 = sshll.u32 %s1510_s24, 4  ;;  %p1393_p0 = scmp.ne.s32.totalorder %s1849_s1, %s1392_s28  ;;  %s25_s25 = int_to_ptr.vmem [resolvable:$true] %s24_s25 }
   0x5   :  { %p1396_p1 = scmp.lt.u32.totalorder %s1392_s28, %s1849_s1 }
   0x7   :  { %p1398_p2 = pnand %p1396_p1, %p1393_p0 }
   0x9   :  { %1401 = shalt.err (!%p1398_p2)
}
   0xa   :  { %s1402_s10 = scalar_lea.vmem %s25_s25, 2048  ;;  %p1407_p4 = scmp.lt.s32.totalorder %s25_s25, %s25_s25 }
   0xb   :  { %p1403_p3 = scmp.ne.s32.totalorder %s25_s25, %s1402_s10  ;;  %p1408_p5 = scmp.lt.s32.totalorder %s1402_s10, %s1402_s10 }
   0xd   :  { %p1409_p6 = por %p1408_p5, %p1407_p4 }
   0xf   :  { %p1410_p7 = pnand %p1409_p6, %p1403_p3 }
  0x11   :  { %1413 = shalt.err (!%p1410_p7)
}
  0x12   :  { %s1511_s11 = smov 256   ;;  %s1512_s12 = smov 16  }
  0x13   :  { %30 = dma.hbm_to_vmem [thread:$0]  %s1849_s1, 2048, %s25_s25, [#allocation5], %s1511_s11, %s1511_s11, %s1512_s12  }
  0x14   :  { %s1513_s15 = smov [#allocation7]   ;;  %s1414_s19 = scalar_lea.hbm %s1850_s2, 2048 }
  0x15   :  { %s36_s16 = sshll.u32 %s1513_s15, 4  ;;  %p1415_p8 = scmp.ne.s32.totalorder %s1850_s2, %s1414_s19  ;;  %s37_s16 = int_to_ptr.vmem [resolvable:$true] %s36_s16 }
  0x16   :  { %p1418_p9 = scmp.lt.u32.totalorder %s1414_s19, %s1850_s2 }
  0x18   :  { %p1420_p10 = pnand %p1418_p9, %p1415_p8 }
  0x1a   :  { %1423 = shalt.err (!%p1420_p10)
}
  0x1b   :  { %s1424_s24 = scalar_lea.vmem %s37_s16, 2048  ;;  %p1429_p12 = scmp.lt.s32.totalorder %s37_s16, %s37_s16 }
  0x1c   :  { %p1425_p11 = scmp.ne.s32.totalorder %s37_s16, %s1424_s24  ;;  %p1430_p13 = scmp.lt.s32.totalorder %s1424_s24, %s1424_s24 }
  0x1e   :  { %p1431_p0 = por %p1430_p13, %p1429_p12 }
  0x20   :  { %p1432_p1 = pnand %p1431_p0, %p1425_p11 }
  0x22   :  { %1435 = shalt.err (!%p1432_p1)
}
  0x23   :  { %42 = dma.hbm_to_vmem [thread:$0]  %s1850_s2, 2048, %s37_s16, [#allocation8], %s1511_s11, %s1511_s11, %s1512_s12  }
  0x24   :  { %1502 = dma.done.wait [#allocation5], 2048  }
  0x25   :  { %1503 = vsyncadd [#allocation5], 4294965248 }
  0x26   :  { %1504 = dma.done.wait [#allocation8], 2048  }
  0x27   :  { %1505 = vsyncadd [#allocation8], 4294965248  ;;  %v1514_v0 = vmov 0.0   ;;  %v63_v1 = vld [vmem:[#allocation7 + $0x8] sm:$0xff]  ;;  %v65_v2 = vld [vmem:[#allocation7 + $0x18] sm:$0xff]  ;;  %vm58_vm0 = vcmask 523264  }
  0x28   :  { %152 = vmatprep.mubr.f32.mxu0 %v1514_v0  ;;  %276 = vmatprep.mubr.f32.mxu1 %v1514_v0  ;;  %v62_v3 = vld [vmem:[#allocation7] sm:$0xff]  ;;  %v1586_v4 = vpack.c.bf16 %v65_v2, %v63_v1  ;;  %v64_v5 = vld [vmem:[#allocation7 + $0x10] sm:$0xff]  ;;  %v67_v6 = vld [vmem:[#allocation7 + $0x28] sm:$0xff]  ;;  %v1515_v32 = vmov 0   ;;  %s1516_s28 = smov 64   ;;  %s1518_s8 = smov [#allocation12]  }
  0x29   :  { %v69_v7 = vld [vmem:[#allocation7 + $0x38] sm:$0xff]  ;;  %v1588_v8 = vpack.c.bf16 %v64_v5, %v62_v3  ;;  %v66_v10 = vld [vmem:[#allocation7 + $0x20] sm:$0xff]  ;;  %v68_v11 = vld [vmem:[#allocation7 + $0x30] sm:$0xff]  ;;  %1294 = vset.pattern.permute.xlu1 %v1515_v32  ;;  %1295 = vset.pattern.permute.xlu0 %v1515_v32  ;;  %s1107_s9 = sshll.u32 %s1518_s8, 4  ;;  %s1800_s9 = int_to_ptr.vmem [resolvable:$true] %s1107_s9 }
  0x2a   :  { %v1590_v9 = vpack.c.bf16 %v69_v7, %v67_v6  ;;  %v71_v12 = vld [vmem:[#allocation7 + $0x48] sm:$0xff]  ;;  %1157 = vmatprep.subr.bf16.mxu0 %v1586_v4  ;;  %v73_v13 = vld [vmem:[#allocation7 + $0x58] sm:$0xff]  ;;  %1173 = vmatprep.subr.bf16.mxu1 %v1586_v4  ;;  %v1595_v14 = vpack.c.bf16 %v68_v11, %v66_v10  ;;  %v70_v16 = vld [vmem:[#allocation7 + $0x40] sm:$0xff] }
  0x2b   :  { %1159 = vmatpush1.bf16.msra.mxu0 %v1588_v8  ;;  %1175 = vmatpush1.bf16.msra.mxu1 %v1588_v8  ;;  %v1599_v15 = vpack.c.bf16 %v73_v13, %v71_v12  ;;  %v72_v17 = vld [vmem:[#allocation7 + $0x50] sm:$0xff]  ;;  %v57_v18 = vld [vmem:[%s1851_s3] sm:$0xff]  ;;  %v75_v19 = vld [vmem:[#allocation7 + $0x68] sm:$0xff] }
  0x2c   :  { %1161 = vmatprep.subr.bf16.mxu0 %v1590_v9  ;;  %1177 = vmatprep.subr.bf16.mxu1 %v1590_v9  ;;  %v77_v20 = vld [vmem:[#allocation7 + $0x78] sm:$0xff]  ;;  %59 = vst.msk [vmem:[#allocation2] sm:$0xff] %vm58_vm0, %v57_v18  ;;  %v1607_v21 = vpack.c.bf16 %v72_v17, %v70_v16  ;;  %v74_v23 = vld [vmem:[#allocation7 + $0x60] sm:$0xff]  ;;  %v76_v24 = vld [vmem:[#allocation7 + $0x70] sm:$0xff] }
  0x2d   :  { %v1611_v22 = vpack.c.bf16 %v77_v20, %v75_v19  ;;  %v1615_v25 = vpack.c.bf16 %v76_v24, %v74_v23  ;;  %v60_v27 = vld [vmem:[%s1852_s4] sm:$0xff]  ;;  %v83_v28 = vld [vmem:[#allocation4 + $0x8] sm:$0xff]  ;;  %v208_v59 = vld [vmem:[#allocation4 + $0x18] sm:$0xff] }
  0x2e   :  { %61 = vst.msk [vmem:[#allocation3] sm:$0xff] %vm58_vm0, %v60_v27  ;;  %v82_v35 = vld [vmem:[#allocation4] sm:$0xff]  ;;  %v207_v2 = vld [vmem:[#allocation4 + $0x10] sm:$0xff] }
  0x2f   :  { %1163 = vmatpush1.bf16.msra.mxu0 %v1595_v14  ;;  %1179 = vmatpush1.bf16.msra.mxu1 %v1595_v14  ;;  %v1648_v40 = vld [vmem:[%s1848_s0] sm:$0xff]  ;;  %s1517_s0 = smov [#allocation10]  }
  0x30   :  { %1165 = vmatprep.subr.bf16.mxu0 %v1599_v15  ;;  %1181 = vmatprep.subr.bf16.mxu1 %v1599_v15  ;;  %vm1127_vm1 = vcmp.gt.s32.totalorder %v1648_v40, 0  ;;  %vm1131_vm3 = vcmp.gt.s32.totalorder %v1648_v40, 1  ;;  %vm1135_vm5 = vcmp.gt.s32.totalorder %v1648_v40, 2  ;;  %vm1139_vm7 = vcmp.gt.s32.totalorder %v1648_v40, 3  ;;  %s1097_s30 = sshll.u32 %s1517_s0, 4  ;;  %s1098_s30 = int_to_ptr.vmem [resolvable:$true] %s1097_s30 }
  0x31   :  { %v197_v44 = vsel %vm1127_vm1, 1, %v1515_v32  ;;  %v318_v1 = vsel %vm1131_vm3, 1, %v1515_v32  ;;  %vm1143_vm9 = vcmp.gt.s32.totalorder %v1648_v40, 4  ;;  %vm1147_vm11 = vcmp.gt.s32.totalorder %v1648_v40, 5  ;;  %s1436_s10 = scalar_lea.vmem %s1098_s30, 128  ;;  %p1441_p3 = scmp.lt.s32.totalorder %s1098_s30, %s1098_s30 }
  0x32   :  { %vm1151_vm13 = vcmp.gt.s32.totalorder %v1648_v40, 6  ;;  %vm1155_vm15 = vcmp.gt.s32.totalorder %v1648_v40, 7  ;;  %vm330_vm1 = vcmask 1048064   ;;  %p1437_p2 = scmp.ne.s32.totalorder %s1098_s30, %s1436_s10  ;;  %p1442_p4 = scmp.lt.s32.totalorder %s1436_s10, %s1436_s10 }
  0x33   :  { %1167 = vmatpush1.bf16.msra.mxu0 %v1607_v21  ;;  %1183 = vmatpush1.bf16.msra.mxu1 %v1607_v21  ;;  %v1621_v26 = vld [vmem:[#allocation2] sm:$0xff] }
  0x34   :  { %1169 = vmatprep.subr.bf16.mxu0 %v1611_v22  ;;  %1185 = vmatprep.subr.bf16.mxu1 %v1611_v22  ;;  %p1443_p5 = por %p1442_p4, %p1441_p3 }
  0x35   :  { %v81_v34 = vld [vmem:[#allocation3] sm:$0xff] }
  0x36   :  { %p1444_p6 = pnand %p1443_p5, %p1437_p2 }
  0x37   :  { %1171 = vmatpush1.bf16.msra.mxu0 %v1615_v25  ;;  %1187 = vmatpush1.bf16.msra.mxu1 %v1615_v25 }
  0x38   :  { %1189 = vmatprep.subr.bf16.mxu0 %v1586_v4  ;;  %1205 = vmatprep.subr.bf16.mxu1 %v1586_v4 }
  0x3a   :  { %1124 = vmatmul.mubr.msk.f32.vlgmr.msra.gmra.mrb[0].mxu0 %vm58_vm0, %v1621_v26 }
  0x3b   :  { %1191 = vmatpush1.bf16.msra.mxu0 %v1588_v8  ;;  %402 = vmatprep.mubr.f32.mxu0 %v1514_v0 }
  0x3c   :  { %1193 = vmatprep.subr.bf16.mxu0 %v1590_v9 }
  0x3f   :  { %1195 = vmatpush1.bf16.msra.mxu0 %v1595_v14 }
  0x40   :  { %1197 = vmatprep.subr.bf16.mxu0 %v1599_v15 }
  0x43   :  { %1199 = vmatpush1.bf16.msra.mxu0 %v1607_v21 }
  0x44   :  { %1201 = vmatprep.subr.bf16.mxu0 %v1611_v22 }
  0x47   :  { %1203 = vmatpush1.bf16.msra.mxu0 %v1615_v25 }
  0x48   :  { %1221 = vmatprep.subr.bf16.mxu0 %v1586_v4 }
 0x10d   :  { %v154_v29 = vpop.f32.mrb[0].mxu0 }
 0x10e   :  { %v156_v30 = vpop.f32.mrb[1].mxu0  ;;  %v159_v36 = vadd.f32 %v154_v29, %v82_v35 }
 0x10f   :  { %v160_v31 = vadd.f32 %v156_v30, %v83_v28 }
 0x110   :  { %v1125_v37 = vmul.f32 -1.442695, %v159_v36 }
 0x111   :  { %1296 = vtanh.f32 %v160_v31  ;;  %v1126_v50 = vmul.f32 -1.442695, %v160_v31  ;;  %v334_v31 = vld [vmem:[#allocation4 + $0x28] sm:$0xff] }
 0x112   :  { %1298 = vpow2.f32 %v1125_v37  ;;  %v444_v37 = vsel %vm1135_vm5, 1, %v1515_v32 }
 0x11b   :  { %v1297_v33 = vpop.eup %1296 }
 0x11c   :  { %180 = vrot.lane.b32.xlu0 %v1297_v33, %s1516_s28  ;;  %v1299_v38 = vpop.eup %1298 }
 0x11d   :  { %v167_v39 = vadd.f32 1.0, %v1299_v38  ;;  %v333_v38 = vld [vmem:[#allocation4 + $0x20] sm:$0xff] }
 0x11f   :  { %1300 = vrcp.f32 %v167_v39 }
 0x120   :  { %175 = vrot.lane.b32.xlu0 %v81_v34, %s1516_s28 }
 0x129   :  { %v1301_v41 = vpop.eup %1300 }
 0x18e   :  { %v181_v42 = vpop.permute.xlu0 %180 }
 0x18f   :  { %v183_v43 = vmul.f32 %v1301_v41, %v181_v42 }
 0x191   :  { %185 = vrot.lane.b32.xlu1 %v183_v43, %s1516_s28 }
 0x192   :  { %v176_v45 = vpop.permute.xlu0 %175 }
 0x193   :  { %v178_v46 = vmul.f32 %v1301_v41, %v176_v45 }
 0x195   :  { %199 = vperm.xlu1 %1294, %v197_v44  }
 0x203   :  { %v186_v47 = vpop.permute.xlu1 %185 }
 0x204   :  { %v188_v48 = vadd.f32 %v186_v47, %v178_v46 }
 0x206   :  { %1302 = vtanh.f32 %v188_v48 }
 0x207   :  { %1304 = vpow2.f32 %v1126_v50 }
 0x210   :  { %v1303_v49 = vpop.eup %1302 }
 0x211   :  { %191 = vrot.lane.b32.xlu0 %v1303_v49, %s1516_s28  ;;  %v1305_v51 = vpop.eup %1304 }
 0x212   :  { %v168_v52 = vadd.f32 1.0, %v1305_v51 }
 0x214   :  { %1306 = vrcp.f32 %v168_v52  ;;  %v200_v53 = vpop.permute.xlu1 %199 }
 0x215   :  { %vm201_vm2 = vcmp.eq.s32.totalorder %v200_v53, 1 }
 0x216   :  { %v203_v13 = vsel %vm201_vm2, %v188_v48, %v176_v45 }
 0x21e   :  { %v1307_v54 = vpop.eup %1306 }
 0x283   :  { %v192_v55 = vpop.permute.xlu0 %191 }
 0x284   :  { %v194_v56 = vmul.f32 %v1307_v54, %v192_v55 }
 0x286   :  { %v204_v57 = vsel %vm201_vm2, %v194_v56, 0.0  ;;  %v202_v58 = vsel %vm201_vm2, %v194_v56, %v1621_v26 }
 0x287   :  { %205 = vst.msk [vmem:[#allocation9] sm:$0xff] %vm58_vm0, %v204_v57  ;;  %1128 = vmatmul.mubr.msk.f32.vlgmr.msra.gmra.mrb[0].mxu1 %vm58_vm0, %v202_v58 }
 0x288   :  { %1207 = vmatpush1.bf16.msra.mxu1 %v1588_v8  ;;  %523 = vmatprep.mubr.f32.mxu1 %v1514_v0 }
 0x289   :  { %1209 = vmatprep.subr.bf16.mxu1 %v1590_v9 }
 0x28c   :  { %1211 = vmatpush1.bf16.msra.mxu1 %v1595_v14 }
 0x28d   :  { %1213 = vmatprep.subr.bf16.mxu1 %v1599_v15 }
 0x290   :  { %1215 = vmatpush1.bf16.msra.mxu1 %v1607_v21 }
 0x291   :  { %1217 = vmatprep.subr.bf16.mxu1 %v1611_v22 }
 0x294   :  { %1219 = vmatpush1.bf16.msra.mxu1 %v1615_v25 }
 0x295   :  { %1237 = vmatprep.subr.bf16.mxu1 %v1586_v4 }
 0x35a   :  { %v278_v60 = vpop.f32.mrb[0].mxu1 }
 0x35b   :  { %v280_v61 = vpop.f32.mrb[1].mxu1  ;;  %v283_v3 = vadd.f32 %v278_v60, %v207_v2 }
 0x35c   :  { %v284_v62 = vadd.f32 %v280_v61, %v208_v59  ;;  %v455_v61 = vld [vmem:[#allocation4 + $0x38] sm:$0xff] }
 0x35d   :  { %v1129_v5 = vmul.f32 -1.442695, %v283_v3  ;;  %v565_v3 = vsel %vm1139_vm7, 1, %v1515_v32 }
 0x35e   :  { %1308 = vtanh.f32 %v284_v62  ;;  %v1130_v20 = vmul.f32 -1.442695, %v284_v62 }
 0x35f   :  { %1310 = vpow2.f32 %v1129_v5  ;;  %v454_v5 = vld [vmem:[#allocation4 + $0x30] sm:$0xff] }
 0x368   :  { %v1309_v63 = vpop.eup %1308 }
 0x369   :  { %300 = vrot.lane.b32.xlu1 %v1309_v63, %s1516_s28  ;;  %v1311_v6 = vpop.eup %1310 }
 0x36a   :  { %v291_v7 = vadd.f32 1.0, %v1311_v6 }
 0x36c   :  { %1312 = vrcp.f32 %v291_v7 }
 0x36d   :  { %320 = vperm.xlu1 %1294, %v318_v1  }
 0x376   :  { %v1313_v10 = vpop.eup %1312 }
 0x377   :  { %v298_v16 = vmul.f32 %v1313_v10, %v203_v13 }
 0x3db   :  { %v301_v11 = vpop.permute.xlu1 %300 }
 0x3dc   :  { %v303_v12 = vmul.f32 %v1313_v10, %v301_v11 }
 0x3de   :  { %305 = vrot.lane.b32.xlu0 %v303_v12, %s1516_s28 }
 0x3ec   :  { %v1674_v26 = vpop.permute.xlu1 %320 }
 0x3ed   :  { %vm322_vm4 = vcmp.eq.s32.totalorder %v1674_v26, 1 }
 0x450   :  { %v306_v17 = vpop.permute.xlu0 %305 }
 0x451   :  { %v308_v18 = vadd.f32 %v306_v17, %v298_v16 }
 0x453   :  { %1314 = vtanh.f32 %v308_v18  ;;  %v324_v47 = vsel %vm322_vm4, %v308_v18, %v203_v13 }
 0x454   :  { %1316 = vpow2.f32 %v1130_v20 }
 0x45d   :  { %v1315_v19 = vpop.eup %1314 }
 0x45e   :  { %311 = vrot.lane.b32.xlu0 %v1315_v19, %s1516_s28  ;;  %v1317_v23 = vpop.eup %1316 }
 0x45f   :  { %v292_v24 = vadd.f32 1.0, %v1317_v23 }
 0x461   :  { %1318 = vrcp.f32 %v292_v24 }
 0x46b   :  { %v1319_v27 = vpop.eup %1318 }
 0x4d0   :  { %v312_v28 = vpop.permute.xlu0 %311 }
 0x4d1   :  { %v1676_v29 = vmul.f32 %v1319_v27, %v312_v28 }
 0x4d3   :  { %v323_v30 = vsel %vm322_vm4, %v1676_v29, %v202_v58 }
 0x4d4   :  { %1132 = vmatmul.mubr.msk.f32.vlgmr.msra.gmra.mrb[2].mxu0 %vm58_vm0, %v323_v30 }
 0x4d5   :  { %1223 = vmatpush1.bf16.msra.mxu0 %v1588_v8  ;;  %648 = vmatprep.mubr.f32.mxu0 %v1514_v0 }
 0x4d6   :  { %1225 = vmatprep.subr.bf16.mxu0 %v1590_v9 }
 0x4d9   :  { %1227 = vmatpush1.bf16.msra.mxu0 %v1595_v14 }
 0x4da   :  { %1229 = vmatprep.subr.bf16.mxu0 %v1599_v15 }
 0x4dd   :  { %1231 = vmatpush1.bf16.msra.mxu0 %v1607_v21 }
 0x4de   :  { %1233 = vmatprep.subr.bf16.mxu0 %v1611_v22 }
 0x4e1   :  { %1235 = vmatpush1.bf16.msra.mxu0 %v1615_v25 }
 0x4e2   :  { %1253 = vmatprep.subr.bf16.mxu0 %v1586_v4 }
 0x5a7   :  { %v404_v33 = vpop.f32.mrb[2].mxu0 }
 0x5a8   :  { %v406_v34 = vpop.f32.mrb[3].mxu0  ;;  %v409_v39 = vadd.f32 %v404_v33, %v333_v38 }
 0x5a9   :  { %v410_v35 = vadd.f32 %v406_v34, %v334_v31 }
 0x5aa   :  { %v1133_v41 = vmul.f32 -1.442695, %v409_v39 }
 0x5ab   :  { %1320 = vtanh.f32 %v410_v35  ;;  %v1134_v52 = vmul.f32 -1.442695, %v410_v35  ;;  %v580_v35 = vld [vmem:[#allocation4 + $0x48] sm:$0xff] }
 0x5ac   :  { %1322 = vpow2.f32 %v1133_v41  ;;  %v690_v41 = vsel %vm1143_vm9, 1, %v1515_v32 }
 0x5b5   :  { %v1321_v36 = vpop.eup %1320 }
 0x5b6   :  { %426 = vrot.lane.b32.xlu1 %v1321_v36, %s1516_s28  ;;  %v1323_v42 = vpop.eup %1322 }
 0x5b7   :  { %v417_v43 = vadd.f32 1.0, %v1323_v42  ;;  %v579_v42 = vld [vmem:[#allocation4 + $0x40] sm:$0xff] }
 0x5b9   :  { %1324 = vrcp.f32 %v417_v43 }
 0x5ba   :  { %446 = vperm.xlu1 %1294, %v444_v37  }
 0x5c3   :  { %v1325_v44 = vpop.eup %1324 }
 0x5c4   :  { %v424_v48 = vmul.f32 %v1325_v44, %v324_v47 }
 0x628   :  { %v427_v45 = vpop.permute.xlu1 %426 }
 0x629   :  { %v429_v46 = vmul.f32 %v1325_v44, %v427_v45 }
 0x62b   :  { %431 = vrot.lane.b32.xlu0 %v429_v46, %s1516_s28 }
 0x639   :  { %v447_v55 = vpop.permute.xlu1 %446 }
 0x63a   :  { %vm448_vm6 = vcmp.eq.s32.totalorder %v447_v55, 1 }
 0x69d   :  { %v432_v49 = vpop.permute.xlu0 %431 }
 0x69e   :  { %v434_v50 = vadd.f32 %v432_v49, %v424_v48 }
 0x6a0   :  { %1326 = vtanh.f32 %v434_v50  ;;  %v450_v16 = vsel %vm448_vm6, %v434_v50, %v324_v47 }
 0x6a1   :  { %1328 = vpow2.f32 %v1134_v52 }
 0x6aa   :  { %v1327_v51 = vpop.eup %1326 }
 0x6ab   :  { %437 = vrot.lane.b32.xlu0 %v1327_v51, %s1516_s28  ;;  %v1329_v53 = vpop.eup %1328 }
 0x6ac   :  { %v418_v54 = vadd.f32 1.0, %v1329_v53 }
 0x6ae   :  { %1330 = vrcp.f32 %v418_v54 }
 0x6b8   :  { %v1331_v56 = vpop.eup %1330 }
 0x71d   :  { %v438_v57 = vpop.permute.xlu0 %437 }
 0x71e   :  { %v440_v58 = vmul.f32 %v1331_v56, %v438_v57 }
 0x720   :  { %v449_v59 = vsel %vm448_vm6, %v440_v58, %v323_v30  ;;  %v451_v60 = vsel %vm448_vm6, %v440_v58, 0.0 }
 0x721   :  { %452 = vst.msk [vmem:[#allocation9 + $0x8] sm:$0xff] %vm58_vm0, %v451_v60  ;;  %1136 = vmatmul.mubr.msk.f32.vlgmr.msra.gmra.mrb[2].mxu1 %vm58_vm0, %v449_v59 }
 0x722   :  { %1239 = vmatpush1.bf16.msra.mxu1 %v1588_v8  ;;  %769 = vmatprep.mubr.f32.mxu1 %v1514_v0 }
 0x723   :  { %1241 = vmatprep.subr.bf16.mxu1 %v1590_v9 }
 0x726   :  { %1243 = vmatpush1.bf16.msra.mxu1 %v1595_v14 }
 0x727   :  { %1245 = vmatprep.subr.bf16.mxu1 %v1599_v15 }
 0x72a   :  { %1247 = vmatpush1.bf16.msra.mxu1 %v1607_v21 }
 0x72b   :  { %1249 = vmatprep.subr.bf16.mxu1 %v1611_v22 }
 0x72e   :  { %1251 = vmatpush1.bf16.msra.mxu1 %v1615_v25 }
 0x72f   :  { %1269 = vmatprep.subr.bf16.mxu1 %v1586_v4 }
 0x7f4   :  { %v525_v62 = vpop.f32.mrb[2].mxu1 }
 0x7f5   :  { %v527_v63 = vpop.f32.mrb[3].mxu1  ;;  %v530_v6 = vadd.f32 %v525_v62, %v454_v5 }
 0x7f6   :  { %v531_v1 = vadd.f32 %v527_v63, %v455_v61 }
 0x7f7   :  { %v1137_v7 = vmul.f32 -1.442695, %v530_v6 }
 0x7f8   :  { %1332 = vtanh.f32 %v531_v1  ;;  %v1138_v23 = vmul.f32 -1.442695, %v531_v1  ;;  %v701_v1 = vld [vmem:[#allocation4 + $0x58] sm:$0xff] }
 0x7f9   :  { %1334 = vpow2.f32 %v1137_v7 }
 0x802   :  { %v1333_v2 = vpop.eup %1332 }
 0x803   :  { %547 = vrot.lane.b32.xlu1 %v1333_v2, %s1516_s28  ;;  %v1335_v10 = vpop.eup %1334 }
 0x804   :  { %v538_v11 = vadd.f32 1.0, %v1335_v10 }
 0x806   :  { %1336 = vrcp.f32 %v538_v11 }
 0x807   :  { %567 = vperm.xlu1 %1294, %v565_v3  }
 0x810   :  { %v1337_v4 = vpop.eup %1336 }
 0x811   :  { %v545_v17 = vmul.f32 %v1337_v4, %v450_v16 }
 0x875   :  { %v548_v12 = vpop.permute.xlu1 %547 }
 0x876   :  { %v550_v13 = vmul.f32 %v1337_v4, %v548_v12 }
 0x878   :  { %552 = vrot.lane.b32.xlu0 %v550_v13, %s1516_s28 }
 0x886   :  { %v1718_v28 = vpop.permute.xlu1 %567 }
 0x887   :  { %vm569_vm8 = vcmp.eq.s32.totalorder %v1718_v28, 1 }
 0x8ea   :  { %v553_v18 = vpop.permute.xlu0 %552 }
 0x8eb   :  { %v555_v19 = vadd.f32 %v553_v18, %v545_v17 }
 0x8ed   :  { %1338 = vtanh.f32 %v555_v19  ;;  %v571_v50 = vsel %vm569_vm8, %v555_v19, %v450_v16 }
 0x8ee   :  { %1340 = vpow2.f32 %v1138_v23 }
 0x8f7   :  { %v1339_v20 = vpop.eup %1338 }
 0x8f8   :  { %558 = vrot.lane.b32.xlu0 %v1339_v20, %s1516_s28  ;;  %v1341_v24 = vpop.eup %1340 }
 0x8f9   :  { %v539_v27 = vadd.f32 1.0, %v1341_v24 }
 0x8fb   :  { %1342 = vrcp.f32 %v539_v27 }
 0x905   :  { %v1343_v30 = vpop.eup %1342 }
 0x96a   :  { %v559_v31 = vpop.permute.xlu0 %558 }
 0x96b   :  { %v1720_v33 = vmul.f32 %v1343_v30, %v559_v31  ;;  %v826_v30 = vld [vmem:[#allocation4 + $0x68] sm:$0xff] }
 0x96d   :  { %v570_v34 = vsel %vm569_vm8, %v1720_v33, %v449_v59 }
 0x96e   :  { %1140 = vmatmul.mubr.msk.f32.vlgmr.msra.gmra.mrb[4].mxu0 %vm58_vm0, %v570_v34 }
 0x96f   :  { %1255 = vmatpush1.bf16.msra.mxu0 %v1588_v8  ;;  %894 = vmatprep.mubr.f32.mxu0 %v1514_v0 }
 0x970   :  { %1257 = vmatprep.subr.bf16.mxu0 %v1590_v9 }
 0x973   :  { %1259 = vmatpush1.bf16.msra.mxu0 %v1595_v14 }
 0x974   :  { %1261 = vmatprep.subr.bf16.mxu0 %v1599_v15 }
 0x977   :  { %1263 = vmatpush1.bf16.msra.mxu0 %v1607_v21 }
 0x978   :  { %1265 = vmatprep.subr.bf16.mxu0 %v1611_v22 }
 0x97b   :  { %1267 = vmatpush1.bf16.msra.mxu0 %v1615_v25 }
 0xa41   :  { %v650_v36 = vpop.f32.mrb[4].mxu0 }
 0xa42   :  { %v652_v37 = vpop.f32.mrb[5].mxu0  ;;  %v655_v43 = vadd.f32 %v650_v36, %v579_v42 }
 0xa43   :  { %v656_v38 = vadd.f32 %v652_v37, %v580_v35  ;;  %v936_v37 = vsel %vm1151_vm13, 1, %v1515_v32 }
 0xa44   :  { %v1141_v44 = vmul.f32 -1.442695, %v655_v43 }
 0xa45   :  { %1344 = vtanh.f32 %v656_v38  ;;  %v1142_v55 = vmul.f32 -1.442695, %v656_v38  ;;  %v825_v38 = vld [vmem:[#allocation4 + $0x60] sm:$0xff] }
 0xa46   :  { %1346 = vpow2.f32 %v1141_v44 }
 0xa4f   :  { %v1345_v39 = vpop.eup %1344 }
 0xa50   :  { %672 = vrot.lane.b32.xlu1 %v1345_v39, %s1516_s28  ;;  %v1347_v45 = vpop.eup %1346 }
 0xa51   :  { %v663_v46 = vadd.f32 1.0, %v1347_v45 }
 0xa53   :  { %1348 = vrcp.f32 %v663_v46 }
 0xa54   :  { %692 = vperm.xlu1 %1294, %v690_v41  }
 0xa5d   :  { %v1349_v47 = vpop.eup %1348 }
 0xa5e   :  { %v670_v51 = vmul.f32 %v1349_v47, %v571_v50 }
 0xac2   :  { %v673_v48 = vpop.permute.xlu1 %672 }
 0xac3   :  { %v675_v49 = vmul.f32 %v1349_v47, %v673_v48 }
 0xac5   :  { %677 = vrot.lane.b32.xlu0 %v675_v49, %s1516_s28 }
 0xad3   :  { %v693_v58 = vpop.permute.xlu1 %692 }
 0xad4   :  { %vm694_vm10 = vcmp.eq.s32.totalorder %v693_v58, 1 }
 0xb37   :  { %v678_v52 = vpop.permute.xlu0 %677 }
 0xb38   :  { %v680_v53 = vadd.f32 %v678_v52, %v670_v51 }
 0xb3a   :  { %1350 = vtanh.f32 %v680_v53  ;;  %v696_v10 = vsel %vm694_vm10, %v680_v53, %v571_v50 }
 0xb3b   :  { %1352 = vpow2.f32 %v1142_v55 }
 0xb44   :  { %v1351_v54 = vpop.eup %1350 }
 0xb45   :  { %683 = vrot.lane.b32.xlu0 %v1351_v54, %s1516_s28  ;;  %v1353_v56 = vpop.eup %1352 }
 0xb46   :  { %v664_v57 = vadd.f32 1.0, %v1353_v56 }
 0xb48   :  { %1354 = vrcp.f32 %v664_v57 }
 0xb52   :  { %v1355_v59 = vpop.eup %1354 }
 0xbb7   :  { %v684_v60 = vpop.permute.xlu0 %683 }
 0xbb8   :  { %v686_v61 = vmul.f32 %v1355_v59, %v684_v60 }
 0xbba   :  { %v695_v62 = vsel %vm694_vm10, %v686_v61, %v570_v34  ;;  %v697_v63 = vsel %vm694_vm10, %v686_v61, 0.0  ;;  %v947_v61 = vld [vmem:[#allocation4 + $0x78] sm:$0xff] }
 0xbbb   :  { %698 = vst.msk [vmem:[#allocation9 + $0x10] sm:$0xff] %vm58_vm0, %v697_v63  ;;  %1144 = vmatmul.mubr.msk.f32.vlgmr.msra.gmra.mrb[4].mxu1 %vm58_vm0, %v695_v62 }
 0xbbc   :  { %1271 = vmatpush1.bf16.msra.mxu1 %v1588_v8  ;;  %1015 = vmatprep.mubr.f32.mxu1 %v1514_v0  ;;  %v811_v8 = vsel %vm1147_vm11, 1, %v1515_v32 }
 0xbbd   :  { %1273 = vmatprep.subr.bf16.mxu1 %v1590_v9  ;;  %v700_v9 = vld [vmem:[#allocation4 + $0x50] sm:$0xff] }
 0xbc0   :  { %1275 = vmatpush1.bf16.msra.mxu1 %v1595_v14 }
 0xbc1   :  { %1277 = vmatprep.subr.bf16.mxu1 %v1599_v15 }
 0xbc4   :  { %1279 = vmatpush1.bf16.msra.mxu1 %v1607_v21 }
 0xbc5   :  { %1281 = vmatprep.subr.bf16.mxu1 %v1611_v22 }
 0xbc8   :  { %1283 = vmatpush1.bf16.msra.mxu1 %v1615_v25 }
 0xc8e   :  { %v771_v2 = vpop.f32.mrb[4].mxu1 }
 0xc8f   :  { %v773_v3 = vpop.f32.mrb[5].mxu1  ;;  %v776_v14 = vadd.f32 %v771_v2, %v700_v9 }
 0xc90   :  { %v777_v5 = vadd.f32 %v773_v3, %v701_v1  ;;  %v1057_v3 = vsel %vm1155_vm15, 1, %v1515_v32 }
 0xc91   :  { %v1145_v15 = vmul.f32 -1.442695, %v776_v14 }
 0xc92   :  { %1356 = vtanh.f32 %v777_v5  ;;  %v1146_v16 = vmul.f32 -1.442695, %v777_v5  ;;  %v325_v5 = vsel %vm322_vm4, %v1676_v29, 0.0 }
 0xc93   :  { %1358 = vpow2.f32 %v1145_v15 }
 0xc9c   :  { %v1357_v0 = vpop.eup %1356 }
 0xc9d   :  { %793 = vrot.lane.b32.xlu1 %v1357_v0, %s1516_s28  ;;  %v1359_v21 = vpop.eup %1358 }
 0xc9e   :  { %v784_v22 = vadd.f32 1.0, %v1359_v21 }
 0xca0   :  { %1360 = vrcp.f32 %v784_v22 }
 0xca1   :  { %813 = vperm.xlu1 %1294, %v811_v8   ;;  %v946_v8 = vld [vmem:[#allocation4 + $0x70] sm:$0xff] }
 0xcaa   :  { %v1361_v25 = vpop.eup %1360 }
 0xcab   :  { %v791_v11 = vmul.f32 %v1361_v25, %v696_v10 }
 0xd0f   :  { %v794_v6 = vpop.permute.xlu1 %793 }
 0xd10   :  { %v796_v7 = vmul.f32 %v1361_v25, %v794_v6 }
 0xd12   :  { %798 = vrot.lane.b32.xlu0 %v796_v7, %s1516_s28 }
 0xd20   :  { %v814_v19 = vpop.permute.xlu1 %813 }
 0xd21   :  { %vm815_vm12 = vcmp.eq.s32.totalorder %v814_v19, 1 }
 0xd84   :  { %v799_v4 = vpop.permute.xlu0 %798 }
 0xd85   :  { %v801_v12 = vadd.f32 %v799_v4, %v791_v11 }
 0xd87   :  { %1362 = vtanh.f32 %v801_v12  ;;  %v817_v47 = vsel %vm815_vm12, %v801_v12, %v696_v10 }
 0xd88   :  { %1364 = vpow2.f32 %v1146_v16 }
 0xd91   :  { %v1363_v13 = vpop.eup %1362 }
 0xd92   :  { %804 = vrot.lane.b32.xlu0 %v1363_v13, %s1516_s28  ;;  %v1365_v17 = vpop.eup %1364  ;;  %v572_v13 = vsel %vm569_vm8, %v1720_v33, 0.0 }
 0xd93   :  { %v785_v18 = vadd.f32 1.0, %v1365_v17 }
 0xd95   :  { %1366 = vrcp.f32 %v785_v18 }
 0xd9f   :  { %v1367_v20 = vpop.eup %1366 }
 0xe04   :  { %v805_v23 = vpop.permute.xlu0 %804 }
 0xe05   :  { %v807_v24 = vmul.f32 %v1367_v20, %v805_v23 }
 0xe07   :  { %v816_v27 = vsel %vm815_vm12, %v807_v24, %v695_v62  ;;  %v818_v0 = vsel %vm815_vm12, %v807_v24, 0.0 }
 0xe08   :  { %1148 = vmatmul.mubr.msk.f32.vlgmr.msra.gmra.mrb[6].mxu0 %vm58_vm0, %v816_v27 }
 0xedb   :  { %v896_v31 = vpop.f32.mrb[6].mxu0 }
 0xedc   :  { %v898_v34 = vpop.f32.mrb[7].mxu0  ;;  %v901_v39 = vadd.f32 %v896_v31, %v825_v38 }
 0xedd   :  { %v902_v35 = vadd.f32 %v898_v34, %v826_v30 }
 0xede   :  { %v1149_v41 = vmul.f32 -1.442695, %v901_v39 }
 0xedf   :  { %1368 = vtanh.f32 %v902_v35  ;;  %v1150_v52 = vmul.f32 -1.442695, %v902_v35 }
 0xee0   :  { %1370 = vpow2.f32 %v1149_v41 }
 0xee9   :  { %v1369_v36 = vpop.eup %1368 }
 0xeea   :  { %918 = vrot.lane.b32.xlu1 %v1369_v36, %s1516_s28  ;;  %v1371_v42 = vpop.eup %1370 }
 0xeeb   :  { %v909_v43 = vadd.f32 1.0, %v1371_v42 }
 0xeed   :  { %1372 = vrcp.f32 %v909_v43 }
 0xeee   :  { %938 = vperm.xlu1 %1294, %v936_v37  }
 0xef7   :  { %v1373_v44 = vpop.eup %1372 }
 0xef8   :  { %v916_v48 = vmul.f32 %v1373_v44, %v817_v47 }
 0xf5c   :  { %v919_v45 = vpop.permute.xlu1 %918 }
 0xf5d   :  { %v921_v46 = vmul.f32 %v1373_v44, %v919_v45 }
 0xf5f   :  { %923 = vrot.lane.b32.xlu0 %v921_v46, %s1516_s28 }
 0xf6d   :  { %v939_v55 = vpop.permute.xlu1 %938 }
 0xf6e   :  { %vm940_vm14 = vcmp.eq.s32.totalorder %v939_v55, 1 }
 0xfd1   :  { %v924_v49 = vpop.permute.xlu0 %923 }
 0xfd2   :  { %v926_v50 = vadd.f32 %v924_v49, %v916_v48 }
 0xfd4   :  { %1374 = vtanh.f32 %v926_v50  ;;  %v942_v6 = vsel %vm940_vm14, %v926_v50, %v817_v47 }
 0xfd5   :  { %1376 = vpow2.f32 %v1150_v52 }
 0xfde   :  { %v1375_v51 = vpop.eup %1374 }
 0xfdf   :  { %929 = vrot.lane.b32.xlu0 %v1375_v51, %s1516_s28  ;;  %v1377_v53 = vpop.eup %1376 }
 0xfe0   :  { %v910_v54 = vadd.f32 1.0, %v1377_v53 }
 0xfe2   :  { %1378 = vrcp.f32 %v910_v54 }
 0xfec   :  { %v1379_v56 = vpop.eup %1378 }
0x1051   :  { %v930_v57 = vpop.permute.xlu0 %929 }
0x1052   :  { %v932_v58 = vmul.f32 %v1379_v56, %v930_v57 }
0x1054   :  { %v1769_v59 = vsel %vm940_vm14, %v932_v58, %v816_v27  ;;  %v943_v60 = vsel %vm940_vm14, %v932_v58, 0.0 }
0x1055   :  { %944 = vst.msk [vmem:[#allocation9 + $0x18] sm:$0xff] %vm58_vm0, %v943_v60  ;;  %1152 = vmatmul.mubr.msk.f32.vlgmr.msra.gmra.mrb[6].mxu1 %vm58_vm0, %v1769_v59 }
0x1128   :  { %v1017_v62 = vpop.f32.mrb[6].mxu1 }
0x1129   :  { %v1019_v63 = vpop.f32.mrb[7].mxu1  ;;  %v1022_v9 = vadd.f32 %v1017_v62, %v946_v8 }
0x112a   :  { %v1023_v1 = vadd.f32 %v1019_v63, %v947_v61 }
0x112b   :  { %v1153_v14 = vmul.f32 -1.442695, %v1022_v9 }
0x112c   :  { %1380 = vtanh.f32 %v1023_v1  ;;  %v1154_v16 = vmul.f32 -1.442695, %v1023_v1 }
0x112d   :  { %1382 = vpow2.f32 %v1153_v14 }
0x1136   :  { %v1381_v2 = vpop.eup %1380 }
0x1137   :  { %1039 = vrot.lane.b32.xlu1 %v1381_v2, %s1516_s28  ;;  %v1383_v40 = vpop.eup %1382 }
0x1138   :  { %v1030_v15 = vadd.f32 1.0, %v1383_v40 }
0x113a   :  { %1384 = vrcp.f32 %v1030_v15 }
0x113b   :  { %1059 = vperm.xlu1 %1294, %v1057_v3  }
0x113f   :  { %327 = vrot.lane.b32.xlu1 %v325_v5, %s1516_s28 }
0x1143   :  { %820 = vrot.lane.b32.xlu1 %v818_v0, %s1516_s28 }
0x1144   :  { %v1385_v21 = vpop.eup %1384 }
0x1145   :  { %v1037_v7 = vmul.f32 %v1385_v21, %v942_v6 }
0x11a9   :  { %v1040_v32 = vpop.permute.xlu1 %1039 }
0x11aa   :  { %v1042_v22 = vmul.f32 %v1385_v21, %v1040_v32 }
0x11ac   :  { %1044 = vrot.lane.b32.xlu0 %v1042_v22, %s1516_s28 }
0x11ba   :  { %v1060_v26 = vpop.permute.xlu1 %1059 }
0x11bb   :  { %vm1061_vm2 = vcmp.eq.s32.totalorder %v1060_v26, 1 }
0x11be   :  { %v328_v29 = vpop.permute.xlu1 %327 }
0x11bf   :  { %331 = vst.msk [vmem:[#allocation9] sm:$0xff] %vm330_vm1, %v328_v29 }
0x11c2   :  { %v821_v25 = vpop.permute.xlu1 %820 }
0x11c3   :  { %823 = vst.msk [vmem:[#allocation9 + $0x10] sm:$0xff] %vm330_vm1, %v821_v25 }
0x121e   :  { %v1045_v10 = vpop.permute.xlu0 %1044 }
0x121f   :  { %v1047_v11 = vadd.f32 %v1045_v10, %v1037_v7 }
0x1221   :  { %1386 = vtanh.f32 %v1047_v11  ;;  %v1063_v4 = vsel %vm1061_vm2, %v1047_v11, %v942_v6 }
0x1222   :  { %1072 = vrot.lane.b32.xlu1 %v1063_v4, %s1516_s28  ;;  %1388 = vpow2.f32 %v1154_v16 }
0x122b   :  { %v1387_v12 = vpop.eup %1386 }
0x122c   :  { %1050 = vrot.lane.b32.xlu0 %v1387_v12, %s1516_s28  ;;  %v1389_v17 = vpop.eup %1388 }
0x122d   :  { %v1031_v18 = vadd.f32 1.0, %v1389_v17 }
0x122f   :  { %1390 = vrcp.f32 %v1031_v18 }
0x1230   :  { %574 = vrot.lane.b32.xlu0 %v572_v13, %s1516_s28 }
0x1239   :  { %v1391_v20 = vpop.eup %1390 }
0x1294   :  { %v1073_v19 = vpop.permute.xlu1 %1072 }
0x1295   :  { %1075 = vst.msk [vmem:[#allocation3] sm:$0xff] %vm58_vm0, %v1073_v19  ;;  %1080 = vst.msk [vmem:[#allocation12] sm:$0xff] %vm58_vm0, %v1073_v19 }
0x129e   :  { %v1051_v23 = vpop.permute.xlu0 %1050 }
0x129f   :  { %v1053_v28 = vmul.f32 %v1391_v20, %v1051_v23 }
0x12a1   :  { %v1064_v33 = vsel %vm1061_vm2, %v1053_v28, 0.0  ;;  %v1062_v24 = vsel %vm1061_vm2, %v1053_v28, %v1769_v59 }
0x12a2   :  { %v575_v27 = vpop.permute.xlu0 %574  ;;  %1066 = vrot.lane.b32.xlu0 %v1064_v33, %s1516_s28  ;;  %1070 = vst.msk [vmem:[#allocation2] sm:$0xff] %vm58_vm0, %v1062_v24  ;;  %1079 = vst.msk [vmem:[#allocation10] sm:$0xff] %vm58_vm0, %v1062_v24 }
0x12a3   :  { %577 = vst.msk [vmem:[#allocation9 + $0x8] sm:$0xff] %vm330_vm1, %v575_v27 }
0x12a4   :  { %1447 = shalt.err (!%p1444_p6)
}
0x12a5   :  { %s1448_s13 = scalar_lea.hbm %s1854_s6, 128 }
0x12a6   :  { %p1449_p7 = scmp.ne.s32.totalorder %s1854_s6, %s1448_s13  ;;  %p1452_p8 = scmp.lt.u32.totalorder %s1448_s13, %s1854_s6 }
0x12a8   :  { %p1454_p9 = pnand %p1452_p8, %p1449_p7 }
0x12aa   :  { %1457 = shalt.err (!%p1454_p9)
}
0x12ab   :  { %1100 = dma.vmem_to_hbm [thread:$0]  %s1098_s30, 128, %s1854_s6, [#allocation11]  }
0x12ac   :  { %s1458_s20 = scalar_lea.vmem %s1800_s9, 128  ;;  %p1463_p11 = scmp.lt.s32.totalorder %s1800_s9, %s1800_s9 }
0x12ad   :  { %p1459_p10 = scmp.ne.s32.totalorder %s1800_s9, %s1458_s20  ;;  %p1464_p12 = scmp.lt.s32.totalorder %s1458_s20, %s1458_s20 }
0x12af   :  { %p1465_p13 = por %p1464_p12, %p1463_p11 }
0x12b1   :  { %p1466_p0 = pnand %p1465_p13, %p1459_p10 }
0x12b3   :  { %1469 = shalt.err (!%p1466_p0)
}
0x12b4   :  { %s1470_s23 = scalar_lea.hbm %s1855_s7, 128 }
0x12b5   :  { %p1471_p1 = scmp.ne.s32.totalorder %s1855_s7, %s1470_s23  ;;  %p1474_p2 = scmp.lt.u32.totalorder %s1470_s23, %s1855_s7 }
0x12b7   :  { %p1476_p3 = pnand %p1474_p2, %p1471_p1 }
0x12b9   :  { %1479 = shalt.err (!%p1476_p3)
}
0x12ba   :  { %1110 = dma.vmem_to_hbm [thread:$0]  %s1800_s9, 128, %s1855_s7, [#allocation11]  }
0x12bb   :  { %s1519_s3 = smov [#allocation9]  }
0x12bc   :  { %s1087_s27 = sshll.u32 %s1519_s3, 4  ;;  %s1088_s27 = int_to_ptr.vmem [resolvable:$true] %s1087_s27 }
0x12bd   :  { %s1480_s28 = scalar_lea.vmem %s1088_s27, 512  ;;  %p1485_p5 = scmp.lt.s32.totalorder %s1088_s27, %s1088_s27 }
0x12be   :  { %p1481_p4 = scmp.ne.s32.totalorder %s1088_s27, %s1480_s28  ;;  %p1486_p6 = scmp.lt.s32.totalorder %s1480_s28, %s1480_s28 }
0x12c0   :  { %p1487_p7 = por %p1486_p6, %p1485_p5 }
0x12c2   :  { %p1488_p8 = pnand %p1487_p7, %p1481_p4 }
0x1314   :  { %v1067_v30 = vpop.permute.xlu0 %1066 }
0x1315   :  { %1069 = vst.msk [vmem:[#allocation9 + $0x18] sm:$0xff] %vm330_vm1, %v1067_v30 }
0x1316   :  { %1491 = shalt.err (!%p1488_p8)
}
0x1317   :  { %s1492_s0 = scalar_lea.hbm %s1853_s5, 512 }
0x1318   :  { %p1493_p9 = scmp.ne.s32.totalorder %s1853_s5, %s1492_s0  ;;  %p1496_p10 = scmp.lt.u32.totalorder %s1492_s0, %s1853_s5 }
0x131a   :  { %p1498_p11 = pnand %p1496_p10, %p1493_p9 }
0x131c   :  { %1501 = shalt.err (!%p1498_p11)
}
0x131d   :  { %1090 = dma.vmem_to_hbm [thread:$0]  %s1088_s27, 512, %s1853_s5, [#allocation6]  }
0x131e   :  { %1506 = dma.done.wait [#allocation6], 512  }
0x131f   :  { %1507 = vsyncadd [#allocation6], 4294966784 }
0x1320   :  { %1508 = dma.done.wait [#allocation11], 256  }
0x1321   :  { %1509 = vsyncadd [#allocation11], 4294967040 }
0x1322   :  { %1120 = vsyncpa [#allocation5], 1 }
0x1323   :  { %1121 = vsyncpa [#allocation8], 1 }
0x1324   :  { %1122 = vsyncpa [#allocation6], 1 }
0x1325   :  { %1123 = vsyncpa [#allocation11], 1 }

</bundles_post_ra>
